<compile_context>
chip_gen: v6e
topology: v6e:2x2x1
jax: 0.10.0
libtpu: 0.0.40
codegen_flags: <defaults>
</compile_context>

<pallas_src>
import jax
import jax.numpy as jnp
import numpy as np
from jax import lax
from jax.experimental import pallas as pl
from jax.experimental.pallas import tpu as pltpu


# ----------------------------------------------------------------------------
# The single fused kernel
# ----------------------------------------------------------------------------
# Data layout inside the kernel (B = batch):
#   x_ref : (B*32, 96)  f32   row r = b*32 + i,    col = j*3 + ch        (NHWC rows)
#   h1    : (B*32, 168) bf16  valid pooled conv1 at rows b*32 + 2*ip, cols 12*jp + c
#   h2    : (B*32, 160) bf16  valid pooled conv2 at rows b*32 + 4*pi, cols 32*pj + d
# Rows/cols outside the "valid" sets hold finite garbage that is either multiplied by the
# zero blocks of the expanded weights or never read; cyclic wrap from the row shifts only
# ever lands in those garbage positions (checked for every consumer below).
def _net_kernel(x_ref, w1_ref, b1_ref, w2_ref, b2_ref,
                w3_ref, b3_ref, w4_ref, b4_ref, w5_ref, b5_ref, o_ref):
    R = x_ref.shape[0]          # B*32
    B = R // 32
    X = x_ref[...]              # (R, 96) f32; bf16 cast happens below (folded into kernel)

    def shift_up(v, k):         # v[r] <- v[r+k] (cyclic; wrap only touches garbage rows)
        if k == 0:
            return v
        return jnp.concatenate([v[k:, :], v[:k, :]], axis=0)

    def shift_left(v, k):       # v[:, m] <- v[:, m+k] (cyclic; wrap only touches garbage cols)
        return jnp.concatenate([v[:, k:], v[:, :k]], axis=1)

    # ---- Stage 1: conv1(5x5,3->6) + bias + ReLU + maxpool2x2 --------------------------
    # One stacked operand (R, 5*96): column ki*96 + (j*3+ch) = x[b, i+ki, j, ch].
    p1 = jnp.concatenate([shift_up(X, ki).astype(jnp.bfloat16) for ki in range(5)], axis=1)
    y1 = jnp.dot(p1, w1_ref[...], preferred_element_type=jnp.float32)   # (R, 168): (i | j,c)
    y1 = jnp.maximum(y1, shift_up(y1, 1))       # pool over i   (single live accumulator)
    y1 = jnp.maximum(y1, shift_left(y1, 6))     # pool over j   (6 = conv1 out channels)
    h1 = jnp.maximum(y1 + b1_ref[...], 0.0).astype(jnp.bfloat16)        # (R, 168)

    # ---- Stage 2: conv2(5x5,6->16) + bias + ReLU + maxpool2x2 -------------------------
    # Pooled rows live every 2nd row of h1, so the row window is shifts by 2*ki (bf16
    # sublane-pair aligned).  Column window extraction is folded into w2e (zero blocks
    # kill the odd-j garbage columns).
    p2 = jnp.concatenate([shift_up(h1, 2 * ki) for ki in range(5)], axis=1)   # (R, 840)
    y2 = jnp.dot(p2, w2_ref[...], preferred_element_type=jnp.float32)   # (R, 160): (oi | oj,d)
    y2 = jnp.maximum(y2, shift_up(y2, 2))       # pool over oi
    y2 = jnp.maximum(y2, shift_left(y2, 16))    # pool over oj  (16 = conv2 out channels)
    h2 = jnp.maximum(y2 + b2_ref[...], 0.0).astype(jnp.bfloat16)        # (R, 160)

    # ---- Stage 3: fc1+ReLU -> fc2+ReLU -> fc3 (all weights VMEM-resident) -------------
    # Gather the 5 valid pooled rows per image into lanes: (B, 800); the NCHW flatten
    # permutation + odd-column masking is pre-folded into w3e.
    rows = []
    for b in range(B):
        rows.append(jnp.concatenate(
            [h2[b * 32 + 4 * pi: b * 32 + 4 * pi + 1, :] for pi in range(5)], axis=1))
    x3 = jnp.concatenate(rows, axis=0)                                   # (B, 800) bf16

    h = jnp.dot(x3, w3_ref[...], preferred_element_type=jnp.float32)
    h = jnp.maximum(h + b3_ref[...], 0.0).astype(jnp.bfloat16)
    h = jnp.dot(h, w4_ref[...], preferred_element_type=jnp.float32)
    h = jnp.maximum(h + b4_ref[...], 0.0).astype(jnp.bfloat16)
    h = jnp.dot(h, w5_ref[...], preferred_element_type=jnp.float32)
    o_ref[...] = (h + b5_ref[...]).astype(o_ref.dtype)


def net_forward(kp, x):
    """x: (B, 3, 32, 32) NCHW f32 (PyTorch convention) -> logits (B, 10) f32."""
    B = x.shape[0]
    # Only per-call XLA glue: NCHW -> NHWC rows (B*32, 96).  Stays f32; cast in kernel.
    x_rows = x.transpose(0, 2, 3, 1).reshape(B * 32, 32 * 3)
    args = (x_rows, kp["w1e"], kp["b1e"], kp["w2e"], kp["b2e"],
            kp["w3e"], kp["fb1"], kp["w4"], kp["fb2"], kp["w5"], kp["fb3"])
    # No grid / no BlockSpecs: whole-array VMEM blocks, single kernel invocation.
    # For large B (v7x: 64 MiB VMEM, 2 TensorCores) add a grid over 32-row image blocks
    # with dimension_semantics=("parallel",) and an explicit vmem_limit_bytes.
    return pl.pallas_call(
        _net_kernel,
        out_shape=jax.ShapeDtypeStruct((B, 10), jnp.float32),
    )(*args)


# ----------------------------------------------------------------------------
# One-time parameter preparation (outside the per-call path)
# ----------------------------------------------------------------------------
def prepare_params(params):
    """Expand PyTorch-layout weights into the block-Toeplitz bf16 MXU operands.

    w1e[(ki, j'*3+ch), (j*6+c)]     = conv1_w[c, ch, ki, j'-j]        (0 <= j'-j < 5)
    w2e[(ki, 12*jp+c), (oj*16+d)]   = conv2_w[d, c,  ki, jp-oj]       (0 <= jp-oj < 5)
    w3e[(pi*160 + 2*pj*16 + d), o]  = fc1_w[d*25 + pi*5 + pj, o]      (NCHW flatten fold)
    Zero rows/blocks mask the garbage (odd-position pooling leftover) columns.
    """
    W1 = np.asarray(params["conv1_w"], np.float32)   # (6, 3, 5, 5)  (cout, cin, kh, kw)
    B1 = np.asarray(params["conv1_b"], np.float32)
    W2 = np.asarray(params["conv2_w"], np.float32)   # (16, 6, 5, 5)
    B2 = np.asarray(params["conv2_b"], np.float32)
    F1 = np.asarray(params["fc1_w"], np.float32)     # (400, 120), rows = NCHW flatten

    w1e = np.zeros((5 * 96, 28 * 6), np.float32)
    for ki in range(5):
        for kj in range(5):
            blk = W1[:, :, ki, kj].T                 # (cin=3, cout=6)
            for j in range(28):
                r = ki * 96 + (j + kj) * 3
                w1e[r:r + 3, j * 6:(j + 1) * 6] = blk
    b1e = np.tile(B1, 28)[None, :]                   # (1, 168), b1e[0, j*6+c] = B1[c]

    w2e = np.zeros((5 * 168, 10 * 16), np.float32)
    for ki in range(5):
        for kj in range(5):
            blk = W2[:, :, ki, kj].T                 # (cin=6, cout=16)
            for oj in range(10):
                r = ki * 168 + 12 * (oj + kj)
                w2e[r:r + 6, oj * 16:(oj + 1) * 16] = blk
    b2e = np.tile(B2, 10)[None, :]                   # (1, 160), b2e[0, oj*16+d] = B2[d]

    w3e = np.zeros((5 * 160, 120), np.float32)
    for pi in range(5):
        for pj in range(5):
            for d in range(16):
                w3e[pi * 160 + 2 * pj * 16 + d, :] = F1[d * 25 + pi * 5 + pj, :]

    bf, f32 = jnp.bfloat16, jnp.float32
    return {
        "w1e": jnp.asarray(w1e, bf), "b1e": jnp.asarray(b1e, f32),
        "w2e": jnp.asarray(w2e, bf), "b2e": jnp.asarray(b2e, f32),
        "w3e": jnp.asarray(w3e, bf),
        "fb1": jnp.asarray(params["fc1_b"], f32).reshape(1, -1),
        "w4": jnp.asarray(params["fc2_w"], bf),
        "fb2": jnp.asarray(params["fc2_b"], f32).reshape(1, -1),
        "w5": jnp.asarray(params["fc3_w"], bf),
        "fb3": jnp.asarray(params["fc3_b"], f32).reshape(1, -1),
    }


# ----------------------------------------------------------------------------
# Pure-JAX reference (same bf16 operand rounding) and init
# ----------------------------------------------------------------------------
def reference_forward(params, x):
    f32 = jnp.float32

    def q(a):  # emulate the kernel's bf16 operand rounding
        return a.astype(jnp.bfloat16).astype(f32)

    def conv(h, w, b):   # w: (cout, cin, kh, kw)
        wq = q(jnp.transpose(w, (2, 3, 1, 0)))       # HWIO
        y = lax.conv_general_dilated(h, wq, (1, 1), "VALID",
                                     dimension_numbers=("NHWC", "HWIO", "NHWC"),
                                     preferred_element_type=f32)
        return jax.nn.relu(y + b.reshape(1, 1, 1, -1))

    def pool(h):
        Bn, H, W, C = h.shape
        return h.reshape(Bn, H // 2, 2, W // 2, 2, C).max(axis=(2, 4))

    h = q(x.transpose(0, 2, 3, 1))
    h = q(pool(conv(h, params["conv1_w"], params["conv1_b"])))
    h = q(pool(conv(h, params["conv2_w"], params["conv2_b"])))
    h = h.transpose(0, 3, 1, 2).reshape(x.shape[0], -1)        # NCHW flatten (PyTorch)
    h = q(jax.nn.relu(h @ q(params["fc1_w"]) + params["fc1_b"]))
    h = q(jax.nn.relu(h @ q(params["fc2_w"]) + params["fc2_b"]))
    return h @ q(params["fc3_w"]) + params["fc3_b"]


def init_params(key):
    """Deterministic PyTorch-style uniform(-1/sqrt(fan_in), 1/sqrt(fan_in)) init."""
    def u(k, shape, fan_in):
        bound = 1.0 / np.sqrt(fan_in)
        return jax.random.uniform(k, shape, jnp.float32, -bound, bound)

    ks = jax.random.split(key, 10)
    return {
        "conv1_w": u(ks[0], (6, 3, 5, 5), 3 * 5 * 5),
        "conv1_b": u(ks[1], (6,), 3 * 5 * 5),
        "conv2_w": u(ks[2], (16, 6, 5, 5), 6 * 5 * 5),
        "conv2_b": u(ks[3], (16,), 6 * 5 * 5),
        # fc weights stored (in, out); rows of fc1_w use PyTorch's NCHW flatten order
        "fc1_w": u(ks[4], (16 * 5 * 5, 120), 16 * 5 * 5),
        "fc1_b": u(ks[5], (120,), 16 * 5 * 5),
        "fc2_w": u(ks[6], (120, 84), 120),
        "fc2_b": u(ks[7], (84,), 120),
        "fc3_w": u(ks[8], (84, 10), 84),
        "fc3_b": u(ks[9], (10,), 84),
    }


if __name__ == "__main__":
    key = jax.random.PRNGKey(0)
    pkey, xkey = jax.random.split(key)
    params = init_params(pkey)
    kparams = prepare_params(params)          # one-time weight expansion / bf16 cast

    # Input: batch=2, NCHW 3x32x32 (required so that fc1 sees 16*5*5 features).
    x = jax.random.normal(xkey, (2, 3, 32, 32), dtype=jnp.float32)

    out = jax.block_until_ready(jax.jit(net_forward)(kparams, x))
    assert out.shape == (2, 10) and out.dtype == jnp.float32

    # Correctness check vs. a pure-JAX reference using the same bf16 operand rounding
    # (only f32 accumulation-order noise remains if the layout folding is right).
    ref = jax.block_until_ready(jax.jit(reference_forward)(params, x))
    np.testing.assert_allclose(np.asarray(out), np.asarray(ref), atol=2e-3, rtol=2e-2)

    print("KERNEL_OK")
</pallas_src>

<mosaic_0001>
module attributes {stable_mosaic.version = 11 : i64} {
  func.func @_net_kernel(%arg0: memref<64x96xf32, #tpu.memory_space<vmem>>, %arg1: memref<480x168xbf16, #tpu.memory_space<vmem>>, %arg2: memref<1x168xf32, #tpu.memory_space<vmem>>, %arg3: memref<840x160xbf16, #tpu.memory_space<vmem>>, %arg4: memref<1x160xf32, #tpu.memory_space<vmem>>, %arg5: memref<800x120xbf16, #tpu.memory_space<vmem>>, %arg6: memref<1x120xf32, #tpu.memory_space<vmem>>, %arg7: memref<120x84xbf16, #tpu.memory_space<vmem>>, %arg8: memref<1x84xf32, #tpu.memory_space<vmem>>, %arg9: memref<84x10xbf16, #tpu.memory_space<vmem>>, %arg10: memref<1x10xf32, #tpu.memory_space<vmem>>, %arg11: memref<2x10xf32, #tpu.memory_space<vmem>>) attributes {dimension_semantics = [], scalar_prefetch = 0 : i64, scratch_operands = 0 : i64, tpu.core_type = #tpu.core_type<tc>} {
    %c0 = arith.constant 0 : index
    %c0_0 = arith.constant 0 : index
    %0 = vector.load %arg0[%c0, %c0_0] : memref<64x96xf32, #tpu.memory_space<vmem>>, vector<64x96xf32>
    %1 = arith.truncf %0 : vector<64x96xf32> to vector<64x96xbf16>
    %2 = vector.extract_strided_slice %0 {offsets = [1, 0], sizes = [63, 96], strides = [1, 1]} : vector<64x96xf32> to vector<63x96xf32>
    %3 = vector.extract_strided_slice %0 {offsets = [0, 0], sizes = [1, 96], strides = [1, 1]} : vector<64x96xf32> to vector<1x96xf32>
    %4 = tpu.concatenate %2, %3 in 0 : vector<63x96xf32>, vector<1x96xf32> -> vector<64x96xf32>
    %5 = arith.truncf %4 : vector<64x96xf32> to vector<64x96xbf16>
    %6 = vector.extract_strided_slice %0 {offsets = [2, 0], sizes = [62, 96], strides = [1, 1]} : vector<64x96xf32> to vector<62x96xf32>
    %7 = vector.extract_strided_slice %0 {offsets = [0, 0], sizes = [2, 96], strides = [1, 1]} : vector<64x96xf32> to vector<2x96xf32>
    %8 = tpu.concatenate %6, %7 in 0 : vector<62x96xf32>, vector<2x96xf32> -> vector<64x96xf32>
    %9 = arith.truncf %8 : vector<64x96xf32> to vector<64x96xbf16>
    %10 = vector.extract_strided_slice %0 {offsets = [3, 0], sizes = [61, 96], strides = [1, 1]} : vector<64x96xf32> to vector<61x96xf32>
    %11 = vector.extract_strided_slice %0 {offsets = [0, 0], sizes = [3, 96], strides = [1, 1]} : vector<64x96xf32> to vector<3x96xf32>
    %12 = tpu.concatenate %10, %11 in 0 : vector<61x96xf32>, vector<3x96xf32> -> vector<64x96xf32>
    %13 = arith.truncf %12 : vector<64x96xf32> to vector<64x96xbf16>
    %14 = vector.extract_strided_slice %0 {offsets = [4, 0], sizes = [60, 96], strides = [1, 1]} : vector<64x96xf32> to vector<60x96xf32>
    %15 = vector.extract_strided_slice %0 {offsets = [0, 0], sizes = [4, 96], strides = [1, 1]} : vector<64x96xf32> to vector<4x96xf32>
    %16 = tpu.concatenate %14, %15 in 0 : vector<60x96xf32>, vector<4x96xf32> -> vector<64x96xf32>
    %17 = arith.truncf %16 : vector<64x96xf32> to vector<64x96xbf16>
    %18 = tpu.concatenate %1, %5, %9, %13, %17 in 1 : vector<64x96xbf16>, vector<64x96xbf16>, vector<64x96xbf16>, vector<64x96xbf16>, vector<64x96xbf16> -> vector<64x480xbf16>
    %c0_1 = arith.constant 0 : index
    %c0_2 = arith.constant 0 : index
    %19 = vector.load %arg1[%c0_1, %c0_2] : memref<480x168xbf16, #tpu.memory_space<vmem>>, vector<480x168xbf16>
    %cst = arith.constant dense<0.000000e+00> : vector<64x168xf32>
    %20 = tpu.matmul %18, %19, %cst {dimension_numbers = #tpu.dot_dimension_numbers<[1], [0], [0], [1], [0, 0, 1, 1], [], []>} : vector<64x480xbf16>, vector<480x168xbf16>, vector<64x168xf32> -> vector<64x168xf32>
    %21 = vector.extract_strided_slice %20 {offsets = [1, 0], sizes = [63, 168], strides = [1, 1]} : vector<64x168xf32> to vector<63x168xf32>
    %22 = vector.extract_strided_slice %20 {offsets = [0, 0], sizes = [1, 168], strides = [1, 1]} : vector<64x168xf32> to vector<1x168xf32>
    %23 = tpu.concatenate %21, %22 in 0 : vector<63x168xf32>, vector<1x168xf32> -> vector<64x168xf32>
    %24 = arith.maximumf %20, %23 : vector<64x168xf32>
    %25 = vector.extract_strided_slice %24 {offsets = [0, 6], sizes = [64, 162], strides = [1, 1]} : vector<64x168xf32> to vector<64x162xf32>
    %26 = vector.extract_strided_slice %24 {offsets = [0, 0], sizes = [64, 6], strides = [1, 1]} : vector<64x168xf32> to vector<64x6xf32>
    %27 = tpu.concatenate %25, %26 in 1 : vector<64x162xf32>, vector<64x6xf32> -> vector<64x168xf32>
    %28 = arith.maximumf %24, %27 : vector<64x168xf32>
    %c0_3 = arith.constant 0 : index
    %c0_4 = arith.constant 0 : index
    %29 = vector.load %arg2[%c0_3, %c0_4] : memref<1x168xf32, #tpu.memory_space<vmem>>, vector<1x168xf32>
    %30 = vector.broadcast %29 : vector<1x168xf32> to vector<64x168xf32>
    %31 = arith.addf %28, %30 : vector<64x168xf32>
    %cst_5 = arith.constant 0.000000e+00 : f32
    %32 = vector.broadcast %cst_5 : f32 to vector<64x168xf32>
    %33 = arith.maximumf %31, %32 : vector<64x168xf32>
    %34 = arith.truncf %33 : vector<64x168xf32> to vector<64x168xbf16>
    %35 = vector.extract_strided_slice %34 {offsets = [2, 0], sizes = [62, 168], strides = [1, 1]} : vector<64x168xbf16> to vector<62x168xbf16>
    %36 = vector.extract_strided_slice %34 {offsets = [0, 0], sizes = [2, 168], strides = [1, 1]} : vector<64x168xbf16> to vector<2x168xbf16>
    %37 = tpu.concatenate %35, %36 in 0 : vector<62x168xbf16>, vector<2x168xbf16> -> vector<64x168xbf16>
    %38 = vector.extract_strided_slice %34 {offsets = [4, 0], sizes = [60, 168], strides = [1, 1]} : vector<64x168xbf16> to vector<60x168xbf16>
    %39 = vector.extract_strided_slice %34 {offsets = [0, 0], sizes = [4, 168], strides = [1, 1]} : vector<64x168xbf16> to vector<4x168xbf16>
    %40 = tpu.concatenate %38, %39 in 0 : vector<60x168xbf16>, vector<4x168xbf16> -> vector<64x168xbf16>
    %41 = vector.extract_strided_slice %34 {offsets = [6, 0], sizes = [58, 168], strides = [1, 1]} : vector<64x168xbf16> to vector<58x168xbf16>
    %42 = vector.extract_strided_slice %34 {offsets = [0, 0], sizes = [6, 168], strides = [1, 1]} : vector<64x168xbf16> to vector<6x168xbf16>
    %43 = tpu.concatenate %41, %42 in 0 : vector<58x168xbf16>, vector<6x168xbf16> -> vector<64x168xbf16>
    %44 = vector.extract_strided_slice %34 {offsets = [8, 0], sizes = [56, 168], strides = [1, 1]} : vector<64x168xbf16> to vector<56x168xbf16>
    %45 = vector.extract_strided_slice %34 {offsets = [0, 0], sizes = [8, 168], strides = [1, 1]} : vector<64x168xbf16> to vector<8x168xbf16>
    %46 = tpu.concatenate %44, %45 in 0 : vector<56x168xbf16>, vector<8x168xbf16> -> vector<64x168xbf16>
    %47 = tpu.concatenate %34, %37, %40, %43, %46 in 1 : vector<64x168xbf16>, vector<64x168xbf16>, vector<64x168xbf16>, vector<64x168xbf16>, vector<64x168xbf16> -> vector<64x840xbf16>
    %c0_6 = arith.constant 0 : index
    %c0_7 = arith.constant 0 : index
    %48 = vector.load %arg3[%c0_6, %c0_7] : memref<840x160xbf16, #tpu.memory_space<vmem>>, vector<840x160xbf16>
    %cst_8 = arith.constant dense<0.000000e+00> : vector<64x160xf32>
    %49 = tpu.matmul %47, %48, %cst_8 {dimension_numbers = #tpu.dot_dimension_numbers<[1], [0], [0], [1], [0, 0, 1, 1], [], []>} : vector<64x840xbf16>, vector<840x160xbf16>, vector<64x160xf32> -> vector<64x160xf32>
    %50 = vector.extract_strided_slice %49 {offsets = [2, 0], sizes = [62, 160], strides = [1, 1]} : vector<64x160xf32> to vector<62x160xf32>
    %51 = vector.extract_strided_slice %49 {offsets = [0, 0], sizes = [2, 160], strides = [1, 1]} : vector<64x160xf32> to vector<2x160xf32>
    %52 = tpu.concatenate %50, %51 in 0 : vector<62x160xf32>, vector<2x160xf32> -> vector<64x160xf32>
    %53 = arith.maximumf %49, %52 : vector<64x160xf32>
    %54 = vector.extract_strided_slice %53 {offsets = [0, 16], sizes = [64, 144], strides = [1, 1]} : vector<64x160xf32> to vector<64x144xf32>
    %55 = vector.extract_strided_slice %53 {offsets = [0, 0], sizes = [64, 16], strides = [1, 1]} : vector<64x160xf32> to vector<64x16xf32>
    %56 = tpu.concatenate %54, %55 in 1 : vector<64x144xf32>, vector<64x16xf32> -> vector<64x160xf32>
    %57 = arith.maximumf %53, %56 : vector<64x160xf32>
    %c0_9 = arith.constant 0 : index
    %c0_10 = arith.constant 0 : index
    %58 = vector.load %arg4[%c0_9, %c0_10] : memref<1x160xf32, #tpu.memory_space<vmem>>, vector<1x160xf32>
    %59 = vector.broadcast %58 : vector<1x160xf32> to vector<64x160xf32>
    %60 = arith.addf %57, %59 : vector<64x160xf32>
    %cst_11 = arith.constant 0.000000e+00 : f32
    %61 = vector.broadcast %cst_11 : f32 to vector<64x160xf32>
    %62 = arith.maximumf %60, %61 : vector<64x160xf32>
    %63 = arith.truncf %62 : vector<64x160xf32> to vector<64x160xbf16>
    %64 = vector.extract_strided_slice %63 {offsets = [0, 0], sizes = [1, 160], strides = [1, 1]} : vector<64x160xbf16> to vector<1x160xbf16>
    %65 = vector.extract_strided_slice %63 {offsets = [4, 0], sizes = [1, 160], strides = [1, 1]} : vector<64x160xbf16> to vector<1x160xbf16>
    %66 = vector.extract_strided_slice %63 {offsets = [8, 0], sizes = [1, 160], strides = [1, 1]} : vector<64x160xbf16> to vector<1x160xbf16>
    %67 = vector.extract_strided_slice %63 {offsets = [12, 0], sizes = [1, 160], strides = [1, 1]} : vector<64x160xbf16> to vector<1x160xbf16>
    %68 = vector.extract_strided_slice %63 {offsets = [16, 0], sizes = [1, 160], strides = [1, 1]} : vector<64x160xbf16> to vector<1x160xbf16>
    %69 = tpu.concatenate %64, %65, %66, %67, %68 in 1 : vector<1x160xbf16>, vector<1x160xbf16>, vector<1x160xbf16>, vector<1x160xbf16>, vector<1x160xbf16> -> vector<1x800xbf16>
    %70 = vector.extract_strided_slice %63 {offsets = [32, 0], sizes = [1, 160], strides = [1, 1]} : vector<64x160xbf16> to vector<1x160xbf16>
    %71 = vector.extract_strided_slice %63 {offsets = [36, 0], sizes = [1, 160], strides = [1, 1]} : vector<64x160xbf16> to vector<1x160xbf16>
    %72 = vector.extract_strided_slice %63 {offsets = [40, 0], sizes = [1, 160], strides = [1, 1]} : vector<64x160xbf16> to vector<1x160xbf16>
    %73 = vector.extract_strided_slice %63 {offsets = [44, 0], sizes = [1, 160], strides = [1, 1]} : vector<64x160xbf16> to vector<1x160xbf16>
    %74 = vector.extract_strided_slice %63 {offsets = [48, 0], sizes = [1, 160], strides = [1, 1]} : vector<64x160xbf16> to vector<1x160xbf16>
    %75 = tpu.concatenate %70, %71, %72, %73, %74 in 1 : vector<1x160xbf16>, vector<1x160xbf16>, vector<1x160xbf16>, vector<1x160xbf16>, vector<1x160xbf16> -> vector<1x800xbf16>
    %76 = tpu.concatenate %69, %75 in 0 : vector<1x800xbf16>, vector<1x800xbf16> -> vector<2x800xbf16>
    %c0_12 = arith.constant 0 : index
    %c0_13 = arith.constant 0 : index
    %77 = vector.load %arg5[%c0_12, %c0_13] : memref<800x120xbf16, #tpu.memory_space<vmem>>, vector<800x120xbf16>
    %cst_14 = arith.constant dense<0.000000e+00> : vector<2x120xf32>
    %78 = tpu.matmul %76, %77, %cst_14 {dimension_numbers = #tpu.dot_dimension_numbers<[1], [0], [0], [1], [0, 0, 1, 1], [], []>} : vector<2x800xbf16>, vector<800x120xbf16>, vector<2x120xf32> -> vector<2x120xf32>
    %c0_15 = arith.constant 0 : index
    %c0_16 = arith.constant 0 : index
    %79 = vector.load %arg6[%c0_15, %c0_16] : memref<1x120xf32, #tpu.memory_space<vmem>>, vector<1x120xf32>
    %80 = vector.broadcast %79 : vector<1x120xf32> to vector<2x120xf32>
    %81 = arith.addf %78, %80 : vector<2x120xf32>
    %cst_17 = arith.constant 0.000000e+00 : f32
    %82 = vector.broadcast %cst_17 : f32 to vector<2x120xf32>
    %83 = arith.maximumf %81, %82 : vector<2x120xf32>
    %84 = arith.truncf %83 : vector<2x120xf32> to vector<2x120xbf16>
    %c0_18 = arith.constant 0 : index
    %c0_19 = arith.constant 0 : index
    %85 = vector.load %arg7[%c0_18, %c0_19] : memref<120x84xbf16, #tpu.memory_space<vmem>>, vector<120x84xbf16>
    %cst_20 = arith.constant dense<0.000000e+00> : vector<2x84xf32>
    %86 = tpu.matmul %84, %85, %cst_20 {dimension_numbers = #tpu.dot_dimension_numbers<[1], [0], [0], [1], [0, 0, 1, 1], [], []>} : vector<2x120xbf16>, vector<120x84xbf16>, vector<2x84xf32> -> vector<2x84xf32>
    %c0_21 = arith.constant 0 : index
    %c0_22 = arith.constant 0 : index
    %87 = vector.load %arg8[%c0_21, %c0_22] : memref<1x84xf32, #tpu.memory_space<vmem>>, vector<1x84xf32>
    %88 = vector.broadcast %87 : vector<1x84xf32> to vector<2x84xf32>
    %89 = arith.addf %86, %88 : vector<2x84xf32>
    %cst_23 = arith.constant 0.000000e+00 : f32
    %90 = vector.broadcast %cst_23 : f32 to vector<2x84xf32>
    %91 = arith.maximumf %89, %90 : vector<2x84xf32>
    %92 = arith.truncf %91 : vector<2x84xf32> to vector<2x84xbf16>
    %c0_24 = arith.constant 0 : index
    %c0_25 = arith.constant 0 : index
    %93 = vector.load %arg9[%c0_24, %c0_25] : memref<84x10xbf16, #tpu.memory_space<vmem>>, vector<84x10xbf16>
    %cst_26 = arith.constant dense<0.000000e+00> : vector<2x10xf32>
    %94 = tpu.matmul %92, %93, %cst_26 {dimension_numbers = #tpu.dot_dimension_numbers<[1], [0], [0], [1], [0, 0, 1, 1], [], []>} : vector<2x84xbf16>, vector<84x10xbf16>, vector<2x10xf32> -> vector<2x10xf32>
    %c0_27 = arith.constant 0 : index
    %c0_28 = arith.constant 0 : index
    %95 = vector.load %arg10[%c0_27, %c0_28] : memref<1x10xf32, #tpu.memory_space<vmem>>, vector<1x10xf32>
    %96 = vector.broadcast %95 : vector<1x10xf32> to vector<2x10xf32>
    %97 = arith.addf %94, %96 : vector<2x10xf32>
    %c0_29 = arith.constant 0 : index
    %c0_30 = arith.constant 0 : index
    %98 = vector.load %arg11[%c0_29, %c0_30] : memref<2x10xf32, #tpu.memory_space<vmem>>, vector<2x10xf32>
    tpu.vector_store %arg11[%c0_29, %c0_30], %97 {strides = array<i32>} : memref<2x10xf32, #tpu.memory_space<vmem>>, vector<2x10xf32>,
    return
  }
}

</mosaic_0001>

<bundles_post_ra>
// kernel: net_forward.1
= control target key start
LH: loop header
LB: loop body
LE: loop exit
PB: predicated region body
PF: predicated region fallthrough
CT: control target
= control target key end

     0   :  { %vm60_vm0 = vcmask 1046528   ;;  %vm120_vm1 = vcmask 1044480   ;;  %vm90_vm2 = vcmask 1045504   ;;  %s4114_s16 = smov 96   ;;  %s4115_s23 = smov 32   ;;  %vm150_vm3 = vcmask 1043456   ;;  %s5814_s0 = inlined_call_operand.vmem [shape: f32[64,96], index: 0, kind: input, shape index: {}]   ;;  %s5815_s1 = inlined_call_operand.vmem [shape: bf16[480,168], index: 1, kind: input, shape index: {}]   ;;  %s5816_s2 = inlined_call_operand.vmem [shape: f32[1,168], index: 2, kind: input, shape index: {}]   ;;  %s5817_s3 = inlined_call_operand.vmem [shape: bf16[840,160], index: 3, kind: input, shape index: {}]   ;;  %s5818_s4 = inlined_call_operand.vmem [shape: f32[1,160], index: 4, kind: input, shape index: {}]   ;;  %s5819_s5 = inlined_call_operand.vmem [shape: bf16[800,120], index: 5, kind: input, shape index: {}]   ;;  %s5820_s6 = inlined_call_operand.vmem [shape: f32[1,120], index: 6, kind: input, shape index: {}]   ;;  %s5821_s7 = inlined_call_operand.vmem [shape: bf16[120,84], index: 7, kind: input, shape index: {}]   ;;  %s5822_s8 = inlined_call_operand.vmem [shape: f32[1,84], index: 8, kind: input, shape index: {}]   ;;  %s5823_s9 = inlined_call_operand.vmem [shape: bf16[84,10], index: 9, kind: input, shape index: {}]   ;;  %s5824_s10 = inlined_call_operand.vmem [shape: f32[1,10], index: 10, kind: input, shape index: {}]   ;;  %s5825_s11 = inlined_call_operand.hbm [shape: f32[2,10], index: 11, kind: output, shape index: {}]  }
   0x1   :  { %v4191_v0 = vld [vmem:[%s5814_s0] sm:$0xff]  ;;  %v4196_v1 = vld [vmem:[%s5814_s0 + $0x8] sm:$0xff]  ;;  %v4201_v2 = vld [vmem:[%s5814_s0 + $0x10] sm:$0xff]  ;;  %s4116_s29 = smov 64   ;;  %vm216_vm4 = vcmask 785408  }
   0x2   :  { %v61_v3 = vrot.slane %v4191_v0, 1  ;;  %v62_v4 = vrot.slane %v4196_v1, 1  ;;  %v64_v5 = vrot.slane %v4201_v2, 1  ;;  %v121_v6 = vrot.slane %v4191_v0, 3  ;;  %v4213_v10 = vld [vmem:[%s5814_s0 + $0x18] sm:$0xff]  ;;  %v4218_v11 = vld [vmem:[%s5814_s0 + $0x20] sm:$0xff] }
   0x3   :  { %v122_v7 = vrot.slane %v4196_v1, 3  ;;  %v124_v8 = vrot.slane %v4201_v2, 3  ;;  %v91_v9 = vrot.slane %v4191_v0, 2  ;;  %v92_v14 = vrot.slane %v4196_v1, 2  ;;  %v4229_v16 = vld [vmem:[%s5814_s0 + $0x28] sm:$0xff]  ;;  %v4234_v17 = vld [vmem:[%s5814_s0 + $0x30] sm:$0xff] }
   0x4   :  { %v63_v12 = vsel %vm60_vm0, %v61_v3, %v62_v4  ;;  %v65_v13 = vsel %vm60_vm0, %v62_v4, %v64_v5  ;;  %v94_v15 = vrot.slane %v4201_v2, 2  ;;  %v66_v21 = vrot.slane %v4213_v10, 1  ;;  %v3780_v22 = vld [vmem:[%s5815_s1 + $0x74] ss:$8 sps:$4 sm:$0xff]   ;;  %v3782_v27 = vld [vmem:[%s5815_s1 + $0x70] ss:$8 sps:$4 sm:$0xff]  }
   0x5   :  { %v86_v18 = vpack.c.bf16 %v65_v13, %v63_v12  ;;  %v123_v19 = vsel %vm120_vm1, %v121_v6, %v122_v7  ;;  %v125_v20 = vsel %vm120_vm1, %v122_v7, %v124_v8  ;;  %v93_v24 = vsel %vm90_vm2, %v91_v9, %v92_v14  ;;  %v4259_v32 = vld [vmem:[%s5814_s0 + $0x38] sm:$0xff]  ;;  %631 = vmatprep.subr.bf16.mxu0 %v3780_v22  ;;  %v3783_v33 = vld [vmem:[%s5815_s1 + $0x64] ss:$8 sps:$4 sm:$0xff]   ;;  %v3785_v34 = vld [vmem:[%s5815_s1 + $0x60] ss:$8 sps:$4 sm:$0xff]  }
   0x6   :  { %v146_v23 = vpack.c.bf16 %v125_v20, %v123_v19  ;;  %v95_v25 = vsel %vm90_vm2, %v92_v14, %v94_v15  ;;  %v68_v26 = vrot.slane %v4218_v11, 1  ;;  %v67_v29 = vsel %vm60_vm0, %v64_v5, %v66_v21  ;;  %632 = vmatpush1.bf16.msra.mxu0 %v3782_v27  ;;  %v3786_v43 = vld [vmem:[%s5815_s1 + $0x174] ss:$8 sps:$4 sm:$0xff]   ;;  %v3790_v48 = vld [vmem:[%s5815_s1 + $0x170] ss:$8 sps:$4 sm:$0xff]  }
   0x7   :  { %184 = vrot.lane.b32.xlu0 %v86_v18, %s4114_s16  ;;  %v116_v28 = vpack.c.bf16 %v95_v25, %v93_v24  ;;  %v96_v30 = vrot.slane %v4213_v10, 2  ;;  %v98_v31 = vrot.slane %v4218_v11, 2  ;;  %v126_v36 = vrot.slane %v4213_v10, 3  ;;  %633 = vmatprep.subr.bf16.mxu0 %v3783_v33  ;;  %v3788_v44 = vld [vmem:[%s5815_s1 + $0x54] ss:$8 sps:$4 sm:$0xff]  }
   0x8   :  { %208 = vrot.lane.b32.xlu1 %v146_v23, %s4115_s23  ;;  %v69_v35 = vsel %vm60_vm0, %v66_v21, %v68_v26  ;;  %v128_v37 = vrot.slane %v4218_v11, 3  ;;  %v70_v38 = vrot.slane %v4229_v16, 1  ;;  %v72_v42 = vrot.slane %v4234_v17, 1  ;;  %704 = vmatprep.subr.bf16.mxu1 %v3786_v43  ;;  %v3792_v53 = vld [vmem:[%s5815_s1 + $0x164] ss:$8 sps:$4 sm:$0xff]  }
   0x9   :  { %v87_v39 = vpack.c.bf16 %v69_v35, %v67_v29  ;;  %v97_v40 = vsel %vm90_vm2, %v94_v15, %v96_v30  ;;  %v99_v41 = vsel %vm90_vm2, %v96_v30, %v98_v31  ;;  %v127_v46 = vsel %vm120_vm1, %v124_v8, %v126_v36  ;;  %705 = vmatpush1.bf16.msra.mxu1 %v3790_v48  ;;  %v3791_v60 = vld [vmem:[%s5815_s1 + $0x50] ss:$8 sps:$4 sm:$0xff]   ;;  %v3794_v61 = vld [vmem:[%s5815_s1 + $0x44] ss:$8 sps:$4 sm:$0xff]   ;;  %v3796_v62 = vld [vmem:[%s5815_s1 + $0x160] ss:$8 sps:$4 sm:$0xff]  }
   0xa   :  { %v117_v45 = vpack.c.bf16 %v99_v41, %v97_v40  ;;  %v129_v47 = vsel %vm120_vm1, %v126_v36, %v128_v37  ;;  %v71_v50 = vsel %vm60_vm0, %v68_v26, %v70_v38  ;;  %v100_v51 = vrot.slane %v4229_v16, 2  ;;  %634 = vmatpush1.bf16.msra.mxu0 %v3785_v34  ;;  %706 = vmatprep.subr.bf16.mxu1 %v3792_v53  ;;  %v3798_v63 = vld [vmem:[%s5815_s1 + $0x154] ss:$8 sps:$4 sm:$0xff]   ;;  %v3797_v15 = vld [vmem:[%s5815_s1 + $0x40] ss:$8 sps:$4 sm:$0xff]  }
   0xb   :  { %196 = vrot.lane.b32.xlu0 %v116_v28, %s4116_s29  ;;  %v147_v49 = vpack.c.bf16 %v129_v47, %v127_v46  ;;  %v102_v52 = vrot.slane %v4234_v17, 2  ;;  %v73_v54 = vsel %vm60_vm0, %v70_v38, %v72_v42  ;;  %v130_v55 = vrot.slane %v4229_v16, 3  ;;  %635 = vmatprep.subr.bf16.mxu0 %v3788_v44  ;;  %v3802_v19 = vld [vmem:[%s5815_s1 + $0x150] ss:$8 sps:$4 sm:$0xff]   ;;  %v3800_v22 = vld [vmem:[%s5815_s1 + $0x34] ss:$8 sps:$4 sm:$0xff]  }
   0xc   :  { %186 = vrot.lane.b32.xlu1 %v87_v39, %s4114_s16  ;;  %v132_v56 = vrot.slane %v4234_v17, 3  ;;  %v74_v57 = vrot.slane %v4259_v32, 1  ;;  %v101_v58 = vsel %vm90_vm2, %v98_v31, %v100_v51  ;;  %v88_v4 = vpack.c.bf16 %v73_v54, %v71_v50  ;;  %v3803_v36 = vld [vmem:[%s5815_s1 + $0x30] ss:$8 sps:$4 sm:$0xff]   ;;  %v3809_v46 = vld [vmem:[%s5815_s1 + $0x20] ss:$8 sps:$4 sm:$0xff]  }
   0xd   :  { %v103_v59 = vsel %vm90_vm2, %v100_v51, %v102_v52  ;;  %v104_v5 = vrot.slane %v4259_v32, 2  ;;  %v134_v7 = vrot.slane %v4259_v32, 3  ;;  %v131_v12 = vsel %vm120_vm1, %v128_v37, %v130_v55  ;;  %707 = vmatpush1.bf16.msra.mxu1 %v3796_v62  ;;  %v3806_v37 = vld [vmem:[%s5815_s1 + $0x24] ss:$8 sps:$4 sm:$0xff]   ;;  %v3814_v50 = vld [vmem:[%s5815_s1 + $0x130] ss:$8 sps:$4 sm:$0xff]  }
   0xe   :  { %v118_v8 = vpack.c.bf16 %v103_v59, %v101_v58  ;;  %v133_v13 = vsel %vm120_vm1, %v130_v55, %v132_v56  ;;  %v75_v14 = vsel %vm60_vm0, %v72_v42, %v74_v57  ;;  %v85_v18 = vsel %vm60_vm0, %v74_v57, %v61_v3  ;;  %636 = vmatpush1.bf16.msra.mxu0 %v3791_v60  ;;  %v3804_v3 = vld [vmem:[%s5815_s1 + $0x144] ss:$8 sps:$4 sm:$0xff]   ;;  %v3812_v54 = vld [vmem:[%s5815_s1 + $0x14] ss:$8 sps:$4 sm:$0xff]   ;;  %v3815_v60 = vld [vmem:[%s5815_s1 + $0x10] ss:$8 sps:$4 sm:$0xff]  }
   0xf   :  { %198 = vrot.lane.b32.xlu0 %v117_v45, %s4116_s29  ;;  %v151_v20 = vrot.slane %v4191_v0, 4  ;;  %v48_v21 = vpack.c.bf16 %v4196_v1, %v4191_v0  ;;  %637 = vmatprep.subr.bf16.mxu0 %v3794_v61  ;;  %v152_v23 = vrot.slane %v4196_v1, 4  ;;  %v49_v24 = vpack.c.bf16 %v4213_v10, %v4201_v2  ;;  %v3816_v55 = vld [vmem:[%s5815_s1 + $0x124] ss:$8 sps:$4 sm:$0xff]   ;;  %v3820_v62 = vld [vmem:[%s5815_s1 + $0x120] ss:$8 sps:$4 sm:$0xff]  }
  0x10   :  { %210 = vrot.lane.b32.xlu1 %v147_v49, %s4115_s23  ;;  %708 = vmatprep.subr.bf16.mxu1 %v3798_v63  ;;  %v50_v25 = vpack.c.bf16 %v4229_v16, %v4218_v11  ;;  %v51_v26 = vpack.c.bf16 %v4259_v32, %v4234_v17  ;;  %v148_v27 = vpack.c.bf16 %v133_v13, %v131_v12  ;;  %v154_v28 = vrot.slane %v4201_v2, 4  ;;  %v3818_v61 = vld [vmem:[%s5815_s1 + $0x4] ss:$8 sps:$4 sm:$0xff]   ;;  %v3822_v63 = vld [vmem:[%s5815_s1 + $0x114] ss:$8 sps:$4 sm:$0xff]  }
  0x11   :  { %v89_v29 = vpack.c.bf16 %v85_v18, %v75_v14  ;;  %v105_v30 = vsel %vm90_vm2, %v102_v52, %v104_v5  ;;  %v115_v31 = vsel %vm90_vm2, %v104_v5, %v91_v9  ;;  %v153_v33 = vsel %vm150_vm3, %v151_v20, %v152_v23  ;;  %709 = vmatpush1.bf16.msra.mxu1 %v3802_v19  ;;  %v3808_v9 = vld [vmem:[%s5815_s1 + $0x140] ss:$8 sps:$4 sm:$0xff]   ;;  %v3826_v5 = vld [vmem:[%s5815_s1 + $0x110] ss:$8 sps:$4 sm:$0xff]   ;;  %v3830_v13 = vld [vmem:[%s5815_s1 + $0xe4] ss:$8 sps:$4 sm:$0xff]  }
  0x12   :  { %v135_v34 = vsel %vm120_vm1, %v132_v56, %v134_v7  ;;  %v145_v35 = vsel %vm120_vm1, %v134_v7, %v121_v6  ;;  %638 = vmatpush1.bf16.msra.mxu0 %v3797_v15  ;;  %v155_v38 = vsel %vm150_vm3, %v152_v23, %v154_v28  ;;  %710 = vmatprep.subr.bf16.mxu1 %v3804_v3  ;;  %v3810_v6 = vld [vmem:[%s5815_s1 + $0x134] ss:$8 sps:$4 sm:$0xff]   ;;  %v156_v40 = vrot.slane %v4213_v10, 4  ;;  %v3827_v12 = vld [vmem:[%s5815_s1 + $0xf0] ss:$8 sps:$4 sm:$0xff]  }
  0x13   :  { %188 = vrot.lane.b32.xlu0 %v88_v4, %s4114_s16  ;;  %639 = vmatprep.subr.bf16.mxu0 %v3800_v22  ;;  %v176_v39 = vpack.c.bf16 %v155_v38, %v153_v33  ;;  %v158_v41 = vrot.slane %v4218_v11, 4  ;;  %v119_v42 = vpack.c.bf16 %v115_v31, %v105_v30  ;;  %v160_v43 = vrot.slane %v4229_v16, 4  ;;  %v3821_v4 = vld [vmem:[%s5815_s1] ss:$8 sps:$4 sm:$0xff]   ;;  %v3824_v7 = vld [vmem:[%s5815_s1 + $0xf4] ss:$8 sps:$4 sm:$0xff]  }
  0x14   :  { %200 = vrot.lane.b32.xlu1 %v118_v8, %s4116_s29  ;;  %v162_v44 = vrot.slane %v4234_v17, 4  ;;  %v149_v45 = vpack.c.bf16 %v145_v35, %v135_v34  ;;  %v4380_v47 = vsel %vm150_vm3, %v154_v28, %v156_v40  ;;  %v164_v49 = vrot.slane %v4259_v32, 4  ;;  %v3828_v8 = vld [vmem:[%s5815_s1 + $0x104] ss:$8 sps:$4 sm:$0xff]   ;;  %v3832_v14 = vld [vmem:[%s5815_s1 + $0x100] ss:$8 sps:$4 sm:$0xff]  }
  0x15   :  { %3452 = vmatprep.mubr.msk.bf16.mxu1 %vm216_vm4, %v176_v39  ;;  %v4383_v48 = vsel %vm150_vm3, %v156_v40, %v158_v41  ;;  %711 = vmatpush1.bf16.msra.mxu1 %v3808_v9  ;;  %v4392_v52 = vsel %vm150_vm3, %v158_v41, %v160_v43  ;;  %v3834_v15 = vld [vmem:[%s5815_s1 + $0x1d4] ss:$8 sps:$4 sm:$0xff]   ;;  %v3833_v18 = vld [vmem:[%s5815_s1 + $0xe0] ss:$8 sps:$4 sm:$0xff]   ;;  %v3838_v19 = vld [vmem:[%s5815_s1 + $0x1d0] ss:$8 sps:$4 sm:$0xff]  }
  0x16   :  { %640 = vmatpush1.bf16.msra.mxu0 %v3803_v36  ;;  %v177_v51 = vpack.c.bf16 %v4383_v48, %v4380_v47  ;;  %v4395_v53 = vsel %vm150_vm3, %v160_v43, %v162_v44  ;;  %712 = vmatprep.subr.bf16.mxu1 %v3810_v6  ;;  %v4406_v57 = vsel %vm150_vm3, %v162_v44, %v164_v49  ;;  %v3840_v22 = vld [vmem:[%s5815_s1 + $0x1c4] ss:$8 sps:$4 sm:$0xff]   ;;  %v3839_v3 = vld [vmem:[%s5815_s1 + $0xd0] ss:$8 sps:$4 sm:$0xff]   ;;  %v3846_v28 = vld [vmem:[%s5815_s1 + $0x1b4] ss:$8 sps:$4 sm:$0xff]  }
  0x17   :  { %212 = vrot.lane.b32.xlu0 %v148_v27, %s4115_s23  ;;  %641 = vmatprep.subr.bf16.mxu0 %v3806_v37  ;;  %v178_v56 = vpack.c.bf16 %v4395_v53, %v4392_v52  ;;  %v4409_v58 = vsel %vm150_vm3, %v164_v49, %v151_v20  ;;  %v3836_v20 = vld [vmem:[%s5815_s1 + $0xd4] ss:$8 sps:$4 sm:$0xff]   ;;  %v3842_v23 = vld [vmem:[%s5815_s1 + $0xc4] ss:$8 sps:$4 sm:$0xff]   ;;  %v3844_v27 = vld [vmem:[%s5815_s1 + $0x1c0] ss:$8 sps:$4 sm:$0xff]  }
  0x18   :  { %190 = vrot.lane.b32.xlu1 %v89_v29, %s4114_s16  ;;  %v179_v59 = vpack.c.bf16 %v4409_v58, %v4406_v57  ;;  %v3845_v29 = vld [vmem:[%s5815_s1 + $0xc0] ss:$8 sps:$4 sm:$0xff]   ;;  %v3850_v30 = vld [vmem:[%s5815_s1 + $0x1b0] ss:$8 sps:$4 sm:$0xff]   ;;  %v3848_v31 = vld [vmem:[%s5815_s1 + $0xb4] ss:$8 sps:$4 sm:$0xff]  }
  0x19   :  { %713 = vmatpush1.bf16.msra.mxu1 %v3814_v50  ;;  %v3852_v33 = vld [vmem:[%s5815_s1 + $0x1a4] ss:$8 sps:$4 sm:$0xff]   ;;  %v3851_v34 = vld [vmem:[%s5815_s1 + $0xb0] ss:$8 sps:$4 sm:$0xff]   ;;  %v3856_v35 = vld [vmem:[%s5815_s1 + $0x1a0] ss:$8 sps:$4 sm:$0xff]  }
  0x1a   :  { %642 = vmatpush1.bf16.msra.mxu0 %v3809_v46  ;;  %714 = vmatprep.subr.bf16.mxu1 %v3816_v55  ;;  %v3854_v36 = vld [vmem:[%s5815_s1 + $0xa4] ss:$8 sps:$4 sm:$0xff]   ;;  %v3858_v37 = vld [vmem:[%s5815_s1 + $0x194] ss:$8 sps:$4 sm:$0xff]   ;;  %v3857_v9 = vld [vmem:[%s5815_s1 + $0xa0] ss:$8 sps:$4 sm:$0xff]  }
  0x1b   :  { %202 = vrot.lane.b32.xlu0 %v119_v42, %s4116_s29  ;;  %643 = vmatprep.subr.bf16.mxu0 %v3812_v54  ;;  %v3862_v38 = vld [vmem:[%s5815_s1 + $0x190] ss:$8 sps:$4 sm:$0xff]   ;;  %v3860_v6 = vld [vmem:[%s5815_s1 + $0x94] ss:$8 sps:$4 sm:$0xff]   ;;  %v3864_v39 = vld [vmem:[%s5815_s1 + $0x184] ss:$8 sps:$4 sm:$0xff]  }
  0x1c   :  { %214 = vrot.lane.b32.xlu1 %v149_v45, %s4115_s23  ;;  %v3863_v40 = vld [vmem:[%s5815_s1 + $0x90] ss:$8 sps:$4 sm:$0xff]   ;;  %v3868_v41 = vld [vmem:[%s5815_s1 + $0x180] ss:$8 sps:$4 sm:$0xff]   ;;  %v3866_v42 = vld [vmem:[%s5815_s1 + $0x84] ss:$8 sps:$4 sm:$0xff]  }
  0x1d   :  { %715 = vmatpush1.bf16.msra.mxu1 %v3820_v62  ;;  %v3869_v43 = vld [vmem:[%s5815_s1 + $0x80] ss:$8 sps:$4 sm:$0xff]  }
  0x1e   :  { %644 = vmatpush1.bf16.msra.mxu0 %v3815_v60  ;;  %716 = vmatprep.subr.bf16.mxu1 %v3822_v63 }
  0x1f   :  { %645 = vmatprep.subr.bf16.mxu0 %v3818_v61 }
  0x21   :  { %717 = vmatpush1.bf16.msra.mxu1 %v3826_v5 }
  0x22   :  { %646 = vmatpush1.bf16.msra.mxu0 %v3821_v4  ;;  %718 = vmatprep.subr.bf16.mxu1 %v3828_v8 }
  0x23   :  { %647 = vmatprep.subr.bf16.mxu0 %v3824_v7 }
  0x25   :  { %719 = vmatpush1.bf16.msra.mxu1 %v3832_v14 }
  0x26   :  { %648 = vmatpush2.bf16.msra.mxu0 %v3827_v12  ;;  %724 = vmatprep.subr.bf16.mxu1 %v3834_v15 }
  0x27   :  { %649 = vmatprep.subr.bf16.mxu0 %v3830_v13 }
  0x29   :  { %725 = vmatpush2.bf16.msra.mxu1 %v3838_v19 }
  0x2a   :  { %650 = vmatpush2.bf16.msra.mxu0 %v3833_v18  ;;  %726 = vmatprep.subr.bf16.mxu1 %v3840_v22 }
  0x2b   :  { %651 = vmatprep.subr.bf16.mxu0 %v3836_v20 }
  0x2d   :  { %727 = vmatpush2.bf16.msra.mxu1 %v3844_v27 }
  0x2e   :  { %652 = vmatpush2.bf16.msra.mxu0 %v3839_v3  ;;  %728 = vmatprep.subr.bf16.mxu1 %v3846_v28 }
  0x2f   :  { %653 = vmatprep.subr.bf16.mxu0 %v3842_v23 }
  0x31   :  { %729 = vmatpush2.bf16.msra.mxu1 %v3850_v30 }
  0x32   :  { %654 = vmatpush2.bf16.msra.mxu0 %v3845_v29  ;;  %730 = vmatprep.subr.bf16.mxu1 %v3852_v33 }
  0x33   :  { %655 = vmatprep.subr.bf16.mxu0 %v3848_v31 }
  0x35   :  { %731 = vmatpush2.bf16.msra.mxu1 %v3856_v35 }
  0x36   :  { %656 = vmatpush2.bf16.msra.mxu0 %v3851_v34  ;;  %732 = vmatprep.subr.bf16.mxu1 %v3858_v37 }
  0x37   :  { %657 = vmatprep.subr.bf16.mxu0 %v3854_v36 }
  0x39   :  { %733 = vmatpush2.bf16.msra.mxu1 %v3862_v38 }
  0x3a   :  { %658 = vmatpush2.bf16.msra.mxu0 %v3857_v9  ;;  %734 = vmatprep.subr.bf16.mxu1 %v3864_v39 }
  0x3b   :  { %659 = vmatprep.subr.bf16.mxu0 %v3860_v6 }
  0x3d   :  { %735 = vmatpush2.bf16.msra.mxu1 %v3868_v41 }
  0x3e   :  { %660 = vmatpush2.bf16.msra.mxu0 %v3863_v40 }
  0x3f   :  { %661 = vmatprep.subr.bf16.mxu0 %v3866_v42 }
  0x42   :  { %662 = vmatpush2.bf16.msra.mxu0 %v3869_v43 }
  0x79   :  { %v185_v44 = vpop.permute.xlu0 %184 }
  0x7a   :  { %v209_v45 = vpop.permute.xlu1 %208 }
  0x7b   :  { %16 = vsyncpa [#allocation3], 0  ;;  %vm233_vm5 = vcmask 523264   ;;  %vm246_vm6 = vcmask 261120   ;;  %v219_v55 = vsel %vm216_vm4, %v48_v21, %v185_v44  ;;  %s4117_s1 = smov 122   ;;  %s4118_s15 = smov 34  }
  0x7c   :  { %vm907_vm7 = vcmask 998400   ;;  %vm956_vm8 = vcmask 277504   ;;  %s4119_s22 = smov 40   ;;  %s4120_s0 = smov 80   ;;  %vm1143_vm9 = vcmask 326656   ;;  %vm1166_vm10 = vcmask 654336  }
  0x7d   :  { %v197_v46 = vpop.permute.xlu0 %196  ;;  %s4121_s24 = smov 120   ;;  %vm1189_vm11 = vcmask 982016   ;;  %vm1918_vm12 = vcmask 588800   ;;  %s4124_s28 = smov 16   ;;  %vm2359_vm13 = vcmask 916480   ;;  %vm2580_vm14 = vcmask 1040384  }
  0x7e   :  { %v235_v49 = vsel %vm233_vm5, %v185_v44, %v197_v46  ;;  %v248_v50 = vsel %vm246_vm6, %v197_v46, %v209_v45  ;;  %v187_v54 = vpop.permute.xlu1 %186  ;;  %vm2581_vm15 = vsmask.f32 256 }
  0x7f   :  { %663 = vmatprep.mubr.bf16.mxu0 %v235_v49  ;;  %737 = vmatmul.mubr.bf16.vlgmr.msra.gmra.mxu1 %v248_v50  ;;  %v223_v0 = vsel %vm216_vm4, %v49_v24, %v187_v54 }
  0x80   :  { %664 = vmatmul.mubr.bf16.vlgmr.msra.gmra.mxu0 %v219_v55  ;;  %3453 = vmatprep.mubr.msk.bf16.mxu1 %vm216_vm4, %v177_v51 }
  0x81   :  { %v199_v60 = vpop.permute.xlu0 %198 }
  0x82   :  { %v238_v61 = vsel %vm233_vm5, %v187_v54, %v199_v60  ;;  %v211_v62 = vpop.permute.xlu1 %210 }
  0x83   :  { %673 = vmatprep.mubr.bf16.mxu0 %v238_v61  ;;  %v251_v63 = vsel %vm246_vm6, %v199_v60, %v211_v62 }
  0x85   :  { %v189_v4 = vpop.permute.xlu0 %188 }
  0x86   :  { %v201_v5 = vpop.permute.xlu1 %200  ;;  %v227_v2 = vsel %vm216_vm4, %v50_v25, %v189_v4 }
  0x87   :  { %747 = vmatmul.mubr.bf16.gmra.mxu1 %v251_v63  ;;  %v241_v1 = vsel %vm233_vm5, %v189_v4, %v201_v5 }
  0x88   :  { %674 = vmatmul.mubr.bf16.gmra.mxu0 %v223_v0  ;;  %3454 = vmatprep.mubr.msk.bf16.mxu1 %vm216_vm4, %v178_v56 }
  0x89   :  { %683 = vmatprep.mubr.bf16.mxu0 %v241_v1  ;;  %v213_v21 = vpop.permute.xlu0 %212 }
  0x8a   :  { %v191_v47 = vpop.permute.xlu1 %190  ;;  %v254_v48 = vsel %vm246_vm6, %v201_v5, %v213_v21 }
  0x8b   :  { %v231_v52 = vsel %vm216_vm4, %v51_v26, %v191_v47 }
  0x8d   :  { %v203_v51 = vpop.permute.xlu0 %202 }
  0x8e   :  { %v244_v7 = vsel %vm233_vm5, %v191_v47, %v203_v51  ;;  %v215_v10 = vpop.permute.xlu1 %214 }
  0x8f   :  { %757 = vmatmul.mubr.bf16.gmra.mxu1 %v254_v48  ;;  %v257_v24 = vsel %vm246_vm6, %v203_v51, %v215_v10 }
  0x90   :  { %684 = vmatmul.mubr.bf16.gmra.mxu0 %v227_v2  ;;  %3455 = vmatprep.mubr.msk.bf16.mxu1 %vm216_vm4, %v179_v59 }
  0x91   :  { %693 = vmatprep.mubr.bf16.mxu0 %v244_v7 }
  0x97   :  { %767 = vmatmul.mubr.bf16.gmra.mxu1 %v257_v24 }
  0x98   :  { %694 = vmatmul.mubr.bf16.gmra.mxu0 %v231_v52 }
 0x13f   :  { %v738_v11 = vpop.f32.mrf.mxu1 }
 0x140   :  { %v665_v16 = vpop.f32.mrf.mxu0 }
 0x141   :  { %v740_v25 = vpop.f32.mrf.mxu1  ;;  %v4559_v56 = vadd.f32 %v738_v11, %v665_v16 }
 0x142   :  { %v667_v53 = vpop.f32.mrf.mxu0 }
 0x143   :  { %v742_v57 = vpop.f32.mrf.mxu1  ;;  %v4561_v59 = vadd.f32 %v740_v25, %v667_v53  ;;  %v793_v14 = vrot.slane %v4559_v56, 1 }
 0x144   :  { %v669_v58 = vpop.f32.mrf.mxu0 }
 0x145   :  { %v743_v8 = vadd.f32 %v742_v57, %v669_v58  ;;  %v744_v12 = vpop.f32.mrf.mxu1  ;;  %v796_v18 = vrot.slane %v4561_v59, 1 }
 0x146   :  { %v671_v13 = vpop.f32.mrf.mxu0 }
 0x147   :  { %v794_v17 = vrot.slane %v743_v8, 1  ;;  %v745_v32 = vadd.f32 %v744_v12, %v671_v13  ;;  %v748_v26 = vpop.f32.mrf.mxu1 }
 0x148   :  { %v675_v15 = vpop.f32.mrf.mxu0 }
 0x149   :  { %v797_v19 = vrot.slane %v745_v32, 1  ;;  %v749_v20 = vadd.f32 %v748_v26, %v675_v15  ;;  %v750_v22 = vpop.f32.mrf.mxu1  ;;  %v795_v3 = vsel %vm60_vm0, %v793_v14, %v794_v17 }
 0x14a   :  { %v677_v23 = vpop.f32.mrf.mxu0  ;;  %v4569_v27 = vmax.f32 %v4559_v56, %v795_v3  ;;  %v3870_v56 = vld [vmem:[%s5817_s3 + $0x70] ss:$8 sps:$4 sm:$0xff]  }
 0x14b   :  { %v799_v28 = vrot.slane %v749_v20, 1  ;;  %v751_v29 = vadd.f32 %v750_v22, %v677_v23  ;;  %v752_v30 = vpop.f32.mrf.mxu1  ;;  %v798_v31 = vsel %vm60_vm0, %v796_v18, %v797_v19 }
 0x14c   :  { %875 = vrot.lane.b32.xlu0 %v4569_v27, %s4117_s1  ;;  %v679_v33 = vpop.f32.mrf.mxu0  ;;  %v4577_v34 = vmax.f32 %v4561_v59, %v798_v31  ;;  %v3872_v59 = vld [vmem:[%s5817_s3 + $0x74] ss:$8 sps:$4 sm:$0xff]  }
 0x14d   :  { %v801_v35 = vrot.slane %v751_v29, 1  ;;  %v753_v36 = vadd.f32 %v752_v30, %v679_v33  ;;  %v754_v37 = vpop.f32.mrf.mxu1  ;;  %v800_v9 = vsel %vm60_vm0, %v794_v17, %v799_v28  ;;  %1937 = vmatprep.subr.bf16.mxu1 %v3872_v59  ;;  %v3944_v59 = vld [vmem:[%s5817_s3 + $0x1d4] ss:$8 sps:$4 sm:$0xff]  }
 0x14e   :  { %877 = vrot.lane.b32.xlu1 %v4577_v34, %s4117_s1  ;;  %v681_v38 = vpop.f32.mrf.mxu0  ;;  %v4582_v6 = vmax.f32 %v743_v8, %v800_v9  ;;  %1938 = vmatpush1.bf16.msra.mxu1 %v3870_v56  ;;  %v3939_v56 = vld [vmem:[%s5817_s3 + $0xa0] ss:$8 sps:$4 sm:$0xff]  }
 0x14f   :  { %v803_v39 = vrot.slane %v753_v36, 1  ;;  %v755_v40 = vadd.f32 %v754_v37, %v681_v38  ;;  %v758_v41 = vpop.f32.mrf.mxu1  ;;  %v802_v42 = vsel %vm60_vm0, %v797_v19, %v801_v35 }
 0x150   :  { %879 = vrot.lane.b32.xlu0 %v4582_v6, %s4117_s1  ;;  %v685_v43 = vpop.f32.mrf.mxu0  ;;  %v4587_v44 = vmax.f32 %v745_v32, %v802_v42 }
 0x151   :  { %v805_v45 = vrot.slane %v755_v40, 1  ;;  %v759_v46 = vadd.f32 %v758_v41, %v685_v43  ;;  %v760_v49 = vpop.f32.mrf.mxu1  ;;  %v804_v50 = vsel %vm60_vm0, %v799_v28, %v803_v39  ;;  %v3876_v43 = vld [vmem:[%s5817_s3 + $0x50] ss:$8 sps:$4 sm:$0xff]  }
 0x152   :  { %881 = vrot.lane.b32.xlu1 %v4587_v44, %s4117_s1  ;;  %v687_v54 = vpop.f32.mrf.mxu0  ;;  %v4592_v55 = vmax.f32 %v749_v20, %v804_v50  ;;  %v3882_v50 = vld [vmem:[%s5817_s3 + $0x170] ss:$8 sps:$4 sm:$0xff]  }
 0x153   :  { %v807_v60 = vrot.slane %v759_v46, 1  ;;  %v761_v61 = vadd.f32 %v760_v49, %v687_v54  ;;  %v762_v62 = vpop.f32.mrf.mxu1  ;;  %v806_v63 = vsel %vm60_vm0, %v801_v35, %v805_v45  ;;  %v3881_v49 = vld [vmem:[%s5817_s3 + $0x44] ss:$8 sps:$4 sm:$0xff]   ;;  %v3884_v54 = vld [vmem:[%s5817_s3 + $0x174] ss:$8 sps:$4 sm:$0xff]  }
 0x154   :  { %883 = vrot.lane.b32.xlu0 %v4592_v55, %s4117_s1  ;;  %v689_v4 = vpop.f32.mrf.mxu0  ;;  %v4597_v5 = vmax.f32 %v751_v29, %v806_v63  ;;  %2010 = vmatprep.subr.bf16.mxu0 %v3884_v54  ;;  %v3890_v63 = vld [vmem:[%s5817_s3 + $0x164] ss:$8 sps:$4 sm:$0xff]  }
 0x155   :  { %v809_v0 = vrot.slane %v761_v61, 1  ;;  %v764_v1 = vpop.f32.mrf.mxu1  ;;  %v808_v21 = vsel %vm60_vm0, %v803_v39, %v807_v60  ;;  %v763_v51 = vadd.f32 %v762_v62, %v689_v4  ;;  %2011 = vmatpush1.bf16.msra.mxu0 %v3882_v50  ;;  %v3888_v62 = vld [vmem:[%s5817_s3 + $0x160] ss:$8 sps:$4 sm:$0xff]   ;;  %v3950_v50 = vld [vmem:[%s5817_s3 + $0x1c4] ss:$8 sps:$4 sm:$0xff]  }
 0x156   :  { %885 = vrot.lane.b32.xlu1 %v4597_v5, %s4117_s1  ;;  %v691_v47 = vpop.f32.mrf.mxu0  ;;  %v4602_v48 = vmax.f32 %v753_v36, %v808_v21  ;;  %v3891_v4 = vld [vmem:[%s5817_s3 + $0x20] ss:$8 sps:$4 sm:$0xff]   ;;  %2012 = vmatprep.subr.bf16.mxu0 %v3890_v63  ;;  %v3896_v21 = vld [vmem:[%s5817_s3 + $0x154] ss:$8 sps:$4 sm:$0xff]  }
 0x157   :  { %v810_v7 = vsel %vm60_vm0, %v805_v45, %v809_v0  ;;  %v768_v2 = vpop.f32.mrf.mxu1  ;;  %v765_v52 = vadd.f32 %v764_v1, %v691_v47  ;;  %v811_v11 = vrot.slane %v763_v51, 1  ;;  %v3878_v45 = vld [vmem:[%s5817_s3 + $0x54] ss:$8 sps:$4 sm:$0xff]   ;;  %v3894_v1 = vld [vmem:[%s5817_s3 + $0x150] ss:$8 sps:$4 sm:$0xff]  }
 0x158   :  { %887 = vrot.lane.b32.xlu0 %v4602_v48, %s4117_s1  ;;  %v695_v10 = vpop.f32.mrf.mxu0  ;;  %v4607_v24 = vmax.f32 %v755_v40, %v810_v7  ;;  %v3897_v47 = vld [vmem:[%s5817_s3 + $0x10] ss:$8 sps:$4 sm:$0xff]   ;;  %v3902_v7 = vld [vmem:[%s5817_s3 + $0x144] ss:$8 sps:$4 sm:$0xff]  }
 0x159   :  { %v770_v16 = vpop.f32.mrf.mxu1  ;;  %v813_v53 = vrot.slane %v765_v52, 1  ;;  %v769_v57 = vadd.f32 %v768_v2, %v695_v10  ;;  %v812_v58 = vsel %vm60_vm0, %v807_v60, %v811_v11  ;;  %v3885_v60 = vld [vmem:[%s5817_s3 + $0x30] ss:$8 sps:$4 sm:$0xff]   ;;  %2013 = vmatpush1.bf16.msra.mxu0 %v3888_v62  ;;  %v3905_v2 = vld [vmem:[%s5817_s3 + $0x4] ss:$8 sps:$4 sm:$0xff]  }
 0x15a   :  { %889 = vrot.lane.b32.xlu1 %v4607_v24, %s4117_s1  ;;  %v697_v25 = vpop.f32.mrf.mxu0  ;;  %v4621_v26 = vmax.f32 %v759_v46, %v812_v58  ;;  %v3879_v46 = vld [vmem:[%s5817_s3 + $0x40] ss:$8 sps:$4 sm:$0xff]   ;;  %2014 = vmatprep.subr.bf16.mxu0 %v3896_v21  ;;  %v3917_v58 = vld [vmem:[%s5817_s3 + $0xe4] ss:$8 sps:$4 sm:$0xff]  }
 0x15b   :  { %v772_v8 = vpop.f32.mrf.mxu1  ;;  %v815_v13 = vrot.slane %v769_v57, 1  ;;  %v771_v17 = vadd.f32 %v770_v16, %v697_v25  ;;  %v814_v32 = vsel %vm60_vm0, %v809_v0, %v813_v53  ;;  %v3893_v0 = vld [vmem:[%s5817_s3 + $0x24] ss:$8 sps:$4 sm:$0xff]   ;;  %v3900_v10 = vld [vmem:[%s5817_s3 + $0x140] ss:$8 sps:$4 sm:$0xff]  }
 0x15c   :  { %932 = vrot.lane.b32.xlu0 %v4569_v27, %s4118_s15  ;;  %v699_v12 = vpop.f32.mrf.mxu0  ;;  %v4625_v20 = vmax.f32 %v761_v61, %v814_v32  ;;  %v3887_v61 = vld [vmem:[%s5817_s3 + $0x34] ss:$8 sps:$4 sm:$0xff]   ;;  %v3906_v25 = vld [vmem:[%s5817_s3 + $0x130] ss:$8 sps:$4 sm:$0xff]   ;;  %v981_v62 = vld [vmem:[%s5816_s2] sm:$0x3] }
 0x15d   :  { %v774_v15 = vpop.f32.mrf.mxu1  ;;  %v817_v22 = vrot.slane %v771_v17, 1  ;;  %v773_v3 = vadd.f32 %v772_v8, %v699_v12  ;;  %v816_v23 = vsel %vm60_vm0, %v811_v11, %v815_v13  ;;  %2015 = vmatpush1.bf16.msra.mxu0 %v3894_v1  ;;  %v3908_v11 = vld [vmem:[%s5817_s3 + $0x134] ss:$8 sps:$4 sm:$0xff]   ;;  %v3912_v8 = vld [vmem:[%s5817_s3 + $0x120] ss:$8 sps:$4 sm:$0xff]  }
 0x15e   :  { %934 = vrot.lane.b32.xlu1 %v4582_v6, %s4118_s15  ;;  %v701_v19 = vpop.f32.mrf.mxu0  ;;  %v4632_v29 = vmax.f32 %v763_v51, %v816_v23  ;;  %v3899_v51 = vld [vmem:[%s5817_s3 + $0x14] ss:$8 sps:$4 sm:$0xff]   ;;  %2016 = vmatprep.subr.bf16.mxu0 %v3902_v7  ;;  %v3915_v12 = vld [vmem:[%s5817_s3 + $0xe0] ss:$8 sps:$4 sm:$0xff]   ;;  %v3918_v32 = vld [vmem:[%s5817_s3 + $0x110] ss:$8 sps:$4 sm:$0xff]  }
 0x15f   :  { %v775_v28 = vadd.f32 %v774_v15, %v701_v19  ;;  %v819_v30 = vrot.slane %v773_v3, 1  ;;  %v818_v31 = vsel %vm60_vm0, %v813_v53, %v817_v22  ;;  %v3911_v16 = vld [vmem:[%s5817_s3 + $0xf4] ss:$8 sps:$4 sm:$0xff]   ;;  %v3909_v53 = vld [vmem:[%s5817_s3 + $0xf0] ss:$8 sps:$4 sm:$0xff]  }
 0x160   :  { %936 = vrot.lane.b32.xlu0 %v4592_v55, %s4118_s15  ;;  %v4640_v36 = vmax.f32 %v765_v52, %v818_v31  ;;  %v3903_v52 = vld [vmem:[%s5817_s3] ss:$8 sps:$4 sm:$0xff]   ;;  %v3921_v15 = vld [vmem:[%s5817_s3 + $0xd0] ss:$8 sps:$4 sm:$0xff]   ;;  %v3926_v19 = vld [vmem:[%s5817_s3 + $0x104] ss:$8 sps:$4 sm:$0xff]  }
 0x161   :  { %v821_v33 = vrot.slane %v775_v28, 1  ;;  %v820_v35 = vsel %vm60_vm0, %v815_v13, %v819_v30  ;;  %v841_v38 = vsel %vm60_vm0, %v819_v30, %v793_v14  ;;  %v3873_v14 = vld [vmem:[%s5817_s3 + $0x60] ss:$8 sps:$4 sm:$0xff]   ;;  %2017 = vmatpush1.bf16.msra.mxu0 %v3900_v10  ;;  %v3920_v13 = vld [vmem:[%s5817_s3 + $0x114] ss:$8 sps:$4 sm:$0xff]  }
 0x162   :  { %938 = vrot.lane.b32.xlu1 %v4602_v48, %s4118_s15  ;;  %v4645_v9 = vmax.f32 %v769_v57, %v820_v35  ;;  %v4657_v41 = vmax.f32 %v773_v3, %v841_v38  ;;  %2018 = vmatprep.subr.bf16.mxu0 %v3908_v11  ;;  %v3914_v57 = vld [vmem:[%s5817_s3 + $0x124] ss:$8 sps:$4 sm:$0xff]   ;;  %v3924_v3 = vld [vmem:[%s5817_s3 + $0x100] ss:$8 sps:$4 sm:$0xff]   ;;  %v3935_v30 = vld [vmem:[%s5817_s3 + $0xb4] ss:$8 sps:$4 sm:$0xff]   ;;  %v983_v38 = vlaneseq }
 0x163   :  { %v822_v37 = vsel %vm60_vm0, %v817_v22, %v821_v33  ;;  %v842_v40 = vsel %vm60_vm0, %v821_v33, %v796_v18  ;;  %v3875_v18 = vld [vmem:[%s5817_s3 + $0x64] ss:$8 sps:$4 sm:$0xff]   ;;  %v3927_v23 = vld [vmem:[%s5817_s3 + $0xc0] ss:$8 sps:$4 sm:$0xff]   ;;  %v3930_v31 = vld [vmem:[%s5817_s3 + $0x1f0] ss:$8 sps:$4 sm:$0xff]  }
 0x164   :  { %891 = vrot.lane.b32.xlu0 %v4621_v26, %s4117_s1  ;;  %v4652_v39 = vmax.f32 %v771_v17, %v822_v37  ;;  %v4661_v42 = vmax.f32 %v775_v28, %v842_v40  ;;  %1939 = vmatprep.subr.bf16.mxu1 %v3875_v18  ;;  %v3923_v17 = vld [vmem:[%s5817_s3 + $0xd4] ss:$8 sps:$4 sm:$0xff]   ;;  %v3929_v22 = vld [vmem:[%s5817_s3 + $0xc4] ss:$8 sps:$4 sm:$0xff]   ;;  %v3933_v33 = vld [vmem:[%s5817_s3 + $0xb0] ss:$8 sps:$4 sm:$0xff]  }
 0x165   :  { %1940 = vmatpush1.bf16.msra.mxu1 %v3873_v14  ;;  %2019 = vmatpush1.bf16.msra.mxu0 %v3906_v25  ;;  %v3932_v28 = vld [vmem:[%s5817_s3 + $0x1f4] ss:$8 sps:$4 sm:$0xff]   ;;  %v3938_v35 = vld [vmem:[%s5817_s3 + $0x1e4] ss:$8 sps:$4 sm:$0xff]   ;;  %v3936_v40 = vld [vmem:[%s5817_s3 + $0x1e0] ss:$8 sps:$4 sm:$0xff]  }
 0x166   :  { %893 = vrot.lane.b32.xlu1 %v4625_v20, %s4117_s1  ;;  %1941 = vmatprep.subr.bf16.mxu1 %v3878_v45  ;;  %v3941_v37 = vld [vmem:[%s5817_s3 + $0xa4] ss:$8 sps:$4 sm:$0xff]   ;;  %v3947_v18 = vld [vmem:[%s5817_s3 + $0x94] ss:$8 sps:$4 sm:$0xff]   ;;  %v3951_v21 = vld [vmem:[%s5817_s3 + $0x80] ss:$8 sps:$4 sm:$0xff]  }
 0x167   :  { %2020 = vmatprep.subr.bf16.mxu0 %v3914_v57  ;;  %v3954_v11 = vld [vmem:[%s5817_s3 + $0x1b0] ss:$8 sps:$4 sm:$0xff]  }
 0x168   :  { %940 = vrot.lane.b32.xlu0 %v4621_v26, %s4118_s15 }
 0x169   :  { %1942 = vmatpush1.bf16.msra.mxu1 %v3876_v43  ;;  %2021 = vmatpush1.bf16.msra.mxu0 %v3912_v8  ;;  %v4821_v43 = vshrl.u32 %v983_v38, 7 }
 0x16a   :  { %942 = vrot.lane.b32.xlu1 %v4632_v29, %s4118_s15  ;;  %1943 = vmatprep.subr.bf16.mxu1 %v3881_v49  ;;  %v3945_v49 = vld [vmem:[%s5817_s3 + $0x90] ss:$8 sps:$4 sm:$0xff]  }
 0x16b   :  { %2022 = vmatprep.subr.bf16.mxu0 %v3920_v13  ;;  %v3959_v13 = vld [vmem:[%s5817_s3 + $0x274] ss:$8 sps:$4 sm:$0xff]  }
 0x16c   :  { %895 = vrot.lane.b32.xlu0 %v4632_v29, %s4117_s1 }
 0x16d   :  { %1944 = vmatpush1.bf16.msra.mxu1 %v3879_v46  ;;  %2023 = vmatpush1.bf16.msra.mxu0 %v3918_v32  ;;  %v3942_v46 = vld [vmem:[%s5817_s3 + $0x1d0] ss:$8 sps:$4 sm:$0xff]  }
 0x16e   :  { %897 = vrot.lane.b32.xlu1 %v4640_v36, %s4117_s1  ;;  %1945 = vmatprep.subr.bf16.mxu1 %v3887_v61  ;;  %v985_v61 = vsub.s32 0, %v4821_v43 }
 0x16f   :  { %2024 = vmatprep.subr.bf16.mxu0 %v3926_v19 }
 0x170   :  { %899 = vrot.lane.b32.xlu0 %v4645_v9, %s4117_s1 }
 0x171   :  { %1946 = vmatpush1.bf16.msra.mxu1 %v3885_v60  ;;  %2025 = vmatpush1.bf16.msra.mxu0 %v3924_v3  ;;  %v3953_v60 = vld [vmem:[%s5817_s3 + $0x84] ss:$8 sps:$4 sm:$0xff]  }
 0x172   :  { %901 = vrot.lane.b32.xlu1 %v4652_v39, %s4117_s1  ;;  %1947 = vmatprep.subr.bf16.mxu1 %v3893_v0  ;;  %v3948_v0 = vld [vmem:[%s5817_s3 + $0x1c0] ss:$8 sps:$4 sm:$0xff]  }
 0x173   :  { %2026 = vmatprep.subr.bf16.mxu0 %v3932_v28 }
 0x174   :  { %903 = vrot.lane.b32.xlu0 %v4657_v41, %s4117_s1 }
 0x175   :  { %1948 = vmatpush1.bf16.msra.mxu1 %v3891_v4  ;;  %2027 = vmatpush2.bf16.msra.mxu0 %v3930_v31  ;;  %v3968_v31 = vld [vmem:[%s5817_s3 + $0x194] ss:$8 sps:$4 sm:$0xff]  }
 0x176   :  { %905 = vrot.lane.b32.xlu1 %v4661_v42, %s4117_s1  ;;  %1949 = vmatprep.subr.bf16.mxu1 %v3899_v51 }
 0x177   :  { %2028 = vmatprep.subr.bf16.mxu0 %v3938_v35 }
 0x178   :  { %944 = vrot.lane.b32.xlu0 %v4645_v9, %s4118_s15 }
 0x179   :  { %1950 = vmatpush1.bf16.msra.mxu1 %v3897_v47  ;;  %2029 = vmatpush2.bf16.msra.mxu0 %v3936_v40  ;;  %v3956_v47 = vld [vmem:[%s5817_s3 + $0x1b4] ss:$8 sps:$4 sm:$0xff]  }
 0x17a   :  { %946 = vrot.lane.b32.xlu1 %v4657_v41, %s4118_s15  ;;  %1951 = vmatprep.subr.bf16.mxu1 %v3905_v2  ;;  %v4853_v2 = vrot.slane %v981_v62, %v985_v61 }
 0x17b   :  { %2030 = vmatprep.subr.bf16.mxu0 %v3944_v59 }
 0x17d   :  { %1952 = vmatpush1.bf16.msra.mxu1 %v3903_v52  ;;  %2031 = vmatpush2.bf16.msra.mxu0 %v3942_v46 }
 0x17e   :  { %1953 = vmatprep.subr.bf16.mxu1 %v3911_v16  ;;  %2032 = vmatprep.subr.bf16.mxu0 %v3950_v50 }
 0x181   :  { %1954 = vmatpush2.bf16.msra.mxu1 %v3909_v53  ;;  %2033 = vmatpush2.bf16.msra.mxu0 %v3948_v0  ;;  %v3972_v0 = vld [vmem:[%s5817_s3 + $0x180] ss:$8 sps:$4 sm:$0xff]  }
 0x182   :  { %1955 = vmatprep.subr.bf16.mxu1 %v3917_v58  ;;  %2034 = vmatprep.subr.bf16.mxu0 %v3956_v47  ;;  %v989_v58 = vsub.s32 1, %v4821_v43 }
 0x185   :  { %1956 = vmatpush2.bf16.msra.mxu1 %v3915_v12  ;;  %2035 = vmatpush2.bf16.msra.mxu0 %v3954_v11 }
 0x186   :  { %1957 = vmatprep.subr.bf16.mxu1 %v3923_v17 }
 0x189   :  { %1958 = vmatpush2.bf16.msra.mxu1 %v3921_v15  ;;  %v3960_v15 = vld [vmem:[%s5817_s3 + $0x1a0] ss:$8 sps:$4 sm:$0xff]  }
 0x18a   :  { %1959 = vmatprep.subr.bf16.mxu1 %v3929_v22  ;;  %v4875_v22 = vrot.slane %v981_v62, %v989_v58 }
 0x18d   :  { %1960 = vmatpush2.bf16.msra.mxu1 %v3927_v23  ;;  %v3962_v23 = vld [vmem:[%s5817_s3 + $0x1a4] ss:$8 sps:$4 sm:$0xff]  }
 0x18e   :  { %1961 = vmatprep.subr.bf16.mxu1 %v3935_v30  ;;  %2036 = vmatprep.subr.bf16.mxu0 %v3962_v23 }
 0x18f   :  { %2037 = vmatpush2.bf16.msra.mxu0 %v3960_v15 }
 0x190   :  { %2038 = vmatprep.subr.bf16.mxu0 %v3968_v31 }
 0x191   :  { %1962 = vmatpush2.bf16.msra.mxu1 %v3933_v33 }
 0x192   :  { %1963 = vmatprep.subr.bf16.mxu1 %v3941_v37 }
 0x195   :  { %1964 = vmatpush2.bf16.msra.mxu1 %v3939_v56 }
 0x196   :  { %1965 = vmatprep.subr.bf16.mxu1 %v3947_v18 }
 0x199   :  { %1966 = vmatpush2.bf16.msra.mxu1 %v3945_v49 }
 0x19a   :  { %1967 = vmatprep.subr.bf16.mxu1 %v3953_v60 }
 0x19d   :  { %1968 = vmatpush2.bf16.msra.mxu1 %v3951_v21 }
 0x19e   :  { %2083 = vmatprep.subr.bf16.mxu1 %v3959_v13 }
 0x1be   :  { %v876_v14 = vpop.permute.xlu0 %875 }
 0x1c0   :  { %v878_v45 = vpop.permute.xlu1 %877 }
 0x1c1   :  { %v908_v63 = vsel %vm907_vm7, %v876_v14, %v878_v45 }
 0x1c2   :  { %v880_v54 = vpop.permute.xlu0 %879  ;;  %v965_v10 = vmax.f32 %v4569_v27, %v908_v63 }
 0x1c4   :  { %v882_v4 = vpop.permute.xlu1 %881  ;;  %v993_v57 = vadd.f32 %v4853_v2, %v965_v10 }
 0x1c5   :  { %v909_v1 = vsel %vm907_vm7, %v880_v54, %v882_v4 }
 0x1c6   :  { %v967_v51 = vmax.f32 %v4582_v6, %v909_v1  ;;  %v884_v7 = vpop.permute.xlu0 %883  ;;  %v1009_v19 = vmax.f32 %v993_v57, 0.0 }
 0x1c8   :  { %v886_v52 = vpop.permute.xlu1 %885  ;;  %v995_v16 = vadd.f32 %v4853_v2, %v967_v51 }
 0x1c9   :  { %v910_v25 = vsel %vm907_vm7, %v884_v7, %v886_v52 }
 0x1ca   :  { %v969_v6 = vmax.f32 %v4592_v55, %v910_v25  ;;  %v888_v53 = vpop.permute.xlu0 %887  ;;  %v1011_v8 = vmax.f32 %v995_v16, 0.0 }
 0x1cc   :  { %v890_v27 = vpop.permute.xlu1 %889  ;;  %v997_v17 = vadd.f32 %v4853_v2, %v969_v6  ;;  %v4886_v33 = vpack.c.bf16 %v1011_v8, %v1009_v19 }
 0x1cd   :  { %v911_v12 = vsel %vm907_vm7, %v888_v53, %v890_v27 }
 0x1ce   :  { %v971_v32 = vmax.f32 %v4602_v48, %v911_v12  ;;  %v933_v55 = vpop.permute.xlu0 %932  ;;  %v1013_v37 = vmax.f32 %v997_v17, 0.0  ;;  %v1042_v50 = vrot.slane %v4886_v33, 1  ;;  %v1063_v21 = vrot.slane %v4886_v33, 2 }
 0x1cf   :  { %v957_v3 = vsel %vm956_vm8, %v878_v45, %v933_v55 }
 0x1d0   :  { %v999_v28 = vadd.f32 %v4853_v2, %v971_v32  ;;  %v966_v48 = vmax.f32 %v4577_v34, %v957_v3  ;;  %v935_v30 = vpop.permute.xlu1 %934  ;;  %v3966_v34 = vld [vmem:[%s5817_s3 + $0x190] ss:$8 sps:$4 sm:$0xff]  }
 0x1d1   :  { %v958_v35 = vsel %vm956_vm8, %v882_v4, %v935_v30  ;;  %2039 = vmatpush2.bf16.msra.mxu0 %v3966_v34 }
 0x1d2   :  { %v1015_v38 = vmax.f32 %v999_v28, 0.0  ;;  %v968_v40 = vmax.f32 %v4587_v44, %v958_v35  ;;  %v937_v56 = vpop.permute.xlu0 %936  ;;  %v994_v59 = vadd.f32 %v4875_v22, %v966_v48 }
 0x1d3   :  { %v959_v14 = vsel %vm956_vm8, %v886_v52, %v937_v56 }
 0x1d4   :  { %v4895_v18 = vpack.c.bf16 %v1015_v38, %v1013_v37  ;;  %v996_v45 = vadd.f32 %v4875_v22, %v968_v40  ;;  %v970_v46 = vmax.f32 %v4597_v5, %v959_v14  ;;  %v939_v49 = vpop.permute.xlu1 %938  ;;  %v3974_v5 = vld [vmem:[%s5817_s3 + $0x184] ss:$8 sps:$4 sm:$0xff]   ;;  %v1010_v1 = vmax.f32 %v994_v59, 0.0 }
 0x1d5   :  { %v960_v44 = vsel %vm956_vm8, %v890_v27, %v939_v49  ;;  %2040 = vmatprep.subr.bf16.mxu0 %v3974_v5  ;;  %v1084_v38 = vrot.slane %v4886_v33, 3 }
 0x1d6   :  { %v1012_v54 = vmax.f32 %v996_v45, 0.0  ;;  %v998_v60 = vadd.f32 %v4875_v22, %v970_v46  ;;  %v972_v62 = vmax.f32 %v4607_v24, %v960_v44  ;;  %v892_v63 = vpop.permute.xlu0 %891  ;;  %v1043_v4 = vrot.slane %v4895_v18, 1  ;;  %2041 = vmatpush2.bf16.msra.mxu0 %v3972_v0 }
 0x1d7   :  { %v1064_v47 = vrot.slane %v4895_v18, 2  ;;  %v1085_v23 = vrot.slane %v4895_v18, 3 }
 0x1d8   :  { %v1000_v51 = vadd.f32 %v4875_v22, %v972_v62  ;;  %v894_v24 = vpop.permute.xlu1 %893  ;;  %v1044_v7 = vsel %vm60_vm0, %v1042_v50, %v1043_v4  ;;  %v4918_v10 = vpack.c.bf16 %v1012_v54, %v1010_v1  ;;  %v1014_v11 = vmax.f32 %v998_v60, 0.0 }
 0x1d9   :  { %1127 = vrot.lane.b32.xlu0 %v1044_v7, %s4119_s22  ;;  %v1065_v52 = vsel %vm90_vm2, %v1063_v21, %v1064_v47  ;;  %v912_v25 = vsel %vm907_vm7, %v892_v63, %v894_v24  ;;  %v1086_v59 = vsel %vm120_vm1, %v1084_v38, %v1085_v23 }
 0x1da   :  { %v1016_v16 = vmax.f32 %v1000_v51, 0.0  ;;  %1150 = vrot.lane.b32.xlu1 %v1065_v52, %s4120_s0  ;;  %v941_v6 = vpop.permute.xlu0 %940  ;;  %v973_v8 = vmax.f32 %v4621_v26, %v912_v25  ;;  %v1066_v12 = vrot.slane %v4918_v10, 2  ;;  %v1045_v55 = vrot.slane %v4918_v10, 1 }
 0x1db   :  { %v961_v53 = vsel %vm956_vm8, %v894_v24, %v941_v6 }
 0x1dc   :  { %v4929_v57 = vpack.c.bf16 %v1016_v16, %v1014_v11  ;;  %v943_v27 = vpop.permute.xlu1 %942  ;;  %v974_v13 = vmax.f32 %v4625_v20, %v961_v53  ;;  %v1001_v20 = vadd.f32 %v4853_v2, %v973_v8 }
 0x1de   :  { %v896_v17 = vpop.permute.xlu0 %895  ;;  %v1067_v32 = vrot.slane %v4929_v57, 2  ;;  %v1046_v15 = vrot.slane %v4929_v57, 1  ;;  %v1002_v30 = vadd.f32 %v4875_v22, %v974_v13  ;;  %v1017_v14 = vmax.f32 %v1001_v20, 0.0 }
 0x1e0   :  { %v898_v19 = vpop.permute.xlu1 %897  ;;  %v1068_v3 = vsel %vm90_vm2, %v1066_v12, %v1067_v32  ;;  %v1047_v26 = vsel %vm60_vm0, %v1045_v55, %v1046_v15 }
 0x1e1   :  { %v913_v28 = vsel %vm907_vm7, %v896_v17, %v898_v19  ;;  %v962_v48 = vsel %vm956_vm8, %v898_v19, %v943_v27  ;;  %1152 = vrot.lane.b32.xlu0 %v1068_v3, %s4120_s0  ;;  %1129 = vrot.lane.b32.xlu1 %v1047_v26, %s4119_s22 }
 0x1e2   :  { %v975_v31 = vmax.f32 %v4632_v29, %v913_v28  ;;  %v976_v35 = vmax.f32 %v4640_v36, %v962_v48  ;;  %v900_v37 = vpop.permute.xlu0 %899  ;;  %v1018_v29 = vmax.f32 %v1002_v30, 0.0 }
 0x1e4   :  { %v1003_v40 = vadd.f32 %v4853_v2, %v975_v31  ;;  %v1004_v56 = vadd.f32 %v4875_v22, %v976_v35  ;;  %v902_v34 = vpop.permute.xlu1 %901 }
 0x1e5   :  { %v914_v45 = vsel %vm907_vm7, %v900_v37, %v902_v34  ;;  %1173 = vrot.lane.b32.xlu0 %v1086_v59, %s4121_s24 }
 0x1e6   :  { %v1019_v36 = vmax.f32 %v1003_v40, 0.0  ;;  %v1020_v46 = vmax.f32 %v1004_v56, 0.0  ;;  %v977_v49 = vmax.f32 %v4645_v9, %v914_v45  ;;  %v904_v44 = vpop.permute.xlu0 %903 }
 0x1e8   :  { %v4963_v54 = vpack.c.bf16 %v1019_v36, %v1017_v14  ;;  %v4965_v60 = vpack.c.bf16 %v1020_v46, %v1018_v29  ;;  %v906_v62 = vpop.permute.xlu1 %905  ;;  %v1005_v0 = vadd.f32 %v4853_v2, %v977_v49  ;;  %v1088_v29 = vrot.slane %v4929_v57, 3 }
 0x1e9   :  { %v915_v63 = vsel %vm907_vm7, %v904_v44, %v906_v62  ;;  %v1106_v46 = vrot.slane %v4895_v18, 4  ;;  %v1105_v49 = vrot.slane %v4886_v33, 4 }
 0x1ea   :  { %v979_v5 = vmax.f32 %v4657_v41, %v915_v63  ;;  %v945_v1 = vpop.permute.xlu0 %944  ;;  %v1069_v51 = vrot.slane %v4963_v54, 2  ;;  %v1048_v24 = vrot.slane %v4963_v54, 1  ;;  %v1050_v9 = vrot.slane %v4965_v60, 1 }
 0x1eb   :  { %v963_v7 = vsel %vm956_vm8, %v902_v34, %v945_v1  ;;  %v1071_v52 = vrot.slane %v4965_v60, 2  ;;  %v1021_v27 = vmax.f32 %v1005_v0, 0.0  ;;  %v1111_v63 = vrot.slane %v4963_v54, 4 }
 0x1ec   :  { %v1007_v11 = vadd.f32 %v4853_v2, %v979_v5  ;;  %v978_v16 = vmax.f32 %v4652_v39, %v963_v7  ;;  %v947_v25 = vpop.permute.xlu1 %946  ;;  %v1070_v41 = vsel %vm90_vm2, %v1064_v47, %v1069_v51  ;;  %v1049_v6 = vsel %vm60_vm0, %v1043_v4, %v1048_v24  ;;  %v4993_v4 = vld [vmem:[%s5817_s3 + $0x340] sm:$0xff] }
 0x1ed   :  { %v964_v53 = vsel %vm956_vm8, %v906_v62, %v947_v25  ;;  %1154 = vrot.lane.b32.xlu0 %v1070_v41, %s4120_s0  ;;  %1131 = vrot.lane.b32.xlu1 %v1049_v6, %s4119_s22  ;;  %v1051_v13 = vsel %vm60_vm0, %v1046_v15, %v1050_v9  ;;  %v1090_v47 = vrot.slane %v4963_v54, 3  ;;  %v1072_v3 = vsel %vm90_vm2, %v1067_v32, %v1071_v52 }
 0x1ee   :  { %v1023_v8 = vmax.f32 %v1007_v11, 0.0  ;;  %v1006_v2 = vadd.f32 %v4875_v22, %v978_v16  ;;  %v980_v39 = vmax.f32 %v4661_v42, %v964_v53  ;;  %v3561_v26 = vcombine.high %v4993_v4, %v4993_v4 }
 0x1ef   :  { %v1107_v62 = vsel %vm150_vm3, %v1105_v49, %v1106_v46  ;;  %v1112_v0 = vsel %vm150_vm3, %v1106_v46, %v1111_v63  ;;  %v3989_v46 = vld [vmem:[%s5817_s3 + $0x204] ss:$8 sps:$4 sm:$0xff]  }
 0x1f0   :  { %v4995_v17 = vpack.c.bf16 %v1023_v8, %v1021_v27  ;;  %v1008_v19 = vadd.f32 %v4875_v22, %v980_v39  ;;  %v1022_v42 = vmax.f32 %v1006_v2, 0.0  ;;  %3562 = vmatprep.subr.msk.bf16.mxu0 %vm150_vm3, %v3561_v26  ;;  %v1091_v22 = vsel %vm120_vm1, %v1085_v23, %v1090_v47  ;;  %v3957_v27 = vld [vmem:[%s5817_s3 + $0x270] ss:$8 sps:$4 sm:$0xff]   ;;  %v3965_v2 = vld [vmem:[%s5817_s3 + $0x264] ss:$8 sps:$4 sm:$0xff]  }
 0x1f1   :  { %1133 = vrot.lane.b32.xlu0 %v1051_v13, %s4119_s22  ;;  %1156 = vrot.lane.b32.xlu1 %v1072_v3, %s4120_s0  ;;  %v3963_v13 = vld [vmem:[%s5817_s3 + $0x260] ss:$8 sps:$4 sm:$0xff]   ;;  %v3969_v3 = vld [vmem:[%s5817_s3 + $0x250] ss:$8 sps:$4 sm:$0xff]   ;;  %v3560_v26 = vcombine.low %v4993_v4, %v4993_v4 }
 0x1f2   :  { %v1024_v15 = vmax.f32 %v1008_v19, 0.0  ;;  %v1052_v20 = vrot.slane %v4995_v17, 1  ;;  %v1073_v48 = vrot.slane %v4995_v17, 2  ;;  %v1094_v37 = vrot.slane %v4995_v17, 3  ;;  %v3980_v4 = vld [vmem:[%s5817_s3 + $0x234] ss:$8 sps:$4 sm:$0xff]  }
 0x1f4   :  { %v5005_v28 = vpack.c.bf16 %v1024_v15, %v1022_v42  ;;  %v1053_v32 = vsel %vm60_vm0, %v1048_v24, %v1052_v20  ;;  %v1074_v31 = vsel %vm90_vm2, %v1069_v51, %v1073_v48  ;;  %v1095_v23 = vsel %vm120_vm1, %v1090_v47, %v1094_v37  ;;  %v3971_v47 = vld [vmem:[%s5817_s3 + $0x254] ss:$8 sps:$4 sm:$0xff]  }
 0x1f5   :  { %1177 = vrot.lane.b32.xlu1 %v1091_v22, %s4121_s24  ;;  %1135 = vrot.lane.b32.xlu0 %v1053_v32, %s4119_s22  ;;  %v1079_v34 = vsel %vm90_vm2, %v1073_v48, %v1063_v21  ;;  %v1058_v59 = vsel %vm60_vm0, %v1052_v20, %v1042_v50  ;;  %v1087_v50 = vrot.slane %v4918_v10, 3  ;;  %v1100_v36 = vsel %vm120_vm1, %v1094_v37, %v1084_v38  ;;  %v3975_v22 = vld [vmem:[%s5817_s3 + $0x240] ss:$8 sps:$4 sm:$0xff]   ;;  %v4001_v37 = vld [vmem:[%s5817_s3 + $0x330] ss:$8 sps:$4 sm:$0xff]  }
 0x1f6   :  { %v1075_v30 = vrot.slane %v5005_v28, 2  ;;  %v1054_v40 = vrot.slane %v5005_v28, 1  ;;  %v1092_v38 = vrot.slane %v4965_v60, 3  ;;  %v1096_v1 = vrot.slane %v5005_v28, 3 }
 0x1f7   :  { %v1089_v21 = vsel %vm120_vm1, %v1087_v50, %v1088_v29  ;;  %v1113_v51 = vrot.slane %v4965_v60, 4  ;;  %v1932_v48 = vsel %vm150_vm3, %v3560_v26, 0 }
 0x1f8   :  { %v1076_v35 = vsel %vm90_vm2, %v1071_v52, %v1075_v30  ;;  %v1055_v56 = vsel %vm60_vm0, %v1050_v9, %v1054_v40  ;;  %v1061_v14 = vsel %vm60_vm0, %v1054_v40, %v1045_v55  ;;  %v1082_v45 = vsel %vm90_vm2, %v1075_v30, %v1066_v12  ;;  %v4003_v30 = vld [vmem:[%s5817_s3 + $0x334] ss:$8 sps:$4 sm:$0xff]   ;;  %v3983_v40 = vld [vmem:[%s5817_s3 + $0x224] ss:$8 sps:$4 sm:$0xff]  }
 0x1f9   :  { %1158 = vrot.lane.b32.xlu1 %v1074_v31, %s4120_s0  ;;  %1160 = vrot.lane.b32.xlu0 %v1076_v35, %s4120_s0  ;;  %v1109_v55 = vrot.slane %v4929_v57, 4  ;;  %v1108_v12 = vrot.slane %v4918_v10, 4  ;;  %v1093_v5 = vsel %vm120_vm1, %v1088_v29, %v1092_v38  ;;  %v1097_v24 = vsel %vm120_vm1, %v1092_v38, %v1096_v1  ;;  %v3978_v35 = vld [vmem:[%s5817_s3 + $0x230] ss:$8 sps:$4 sm:$0xff]   ;;  %v3986_v29 = vld [vmem:[%s5817_s3 + $0x214] ss:$8 sps:$4 sm:$0xff]  }
 0x1fa   :  { %v1117_v9 = vrot.slane %v5005_v28, 4  ;;  %v1115_v52 = vrot.slane %v4995_v17, 4  ;;  %v1103_v41 = vsel %vm120_vm1, %v1096_v1, %v1087_v50  ;;  %v4015_v50 = vld [vmem:[%s5817_s3 + $0x314] ss:$8 sps:$4 sm:$0xff]   ;;  %v4019_v38 = vld [vmem:[%s5817_s3 + $0x300] ss:$8 sps:$4 sm:$0xff]   ;;  %vm5540_vm1 = vmand %vm2580_vm14, %vm2581_vm15 }
 0x1fb   :  { %v1110_v44 = vsel %vm150_vm3, %v1108_v12, %v1109_v55  ;;  %v1114_v7 = vsel %vm150_vm3, %v1109_v55, %v1113_v51  ;;  %v4013_v55 = vld [vmem:[%s5817_s3 + $0x310] ss:$8 sps:$4 sm:$0xff]   ;;  %v3992_v1 = vld [vmem:[%s5817_s3 + $0x2f4] ss:$8 sps:$4 sm:$0xff]   ;;  %vm2408_vm0 = vcmask 130048  }
 0x1fc   :  { %v1118_v11 = vsel %vm150_vm3, %v1113_v51, %v1117_v9  ;;  %v1116_v16 = vsel %vm150_vm3, %v1111_v63, %v1115_v52  ;;  %v1121_v25 = vsel %vm150_vm3, %v1115_v52, %v1105_v49  ;;  %v1124_v6 = vsel %vm150_vm3, %v1117_v9, %v1108_v12  ;;  %v3987_v63 = vld [vmem:[%s5817_s3 + $0x200] ss:$8 sps:$4 sm:$0xff]   ;;  %v3997_v9 = vld [vmem:[%s5817_s3 + $0x2e4] ss:$8 sps:$4 sm:$0xff]  }
 0x1fd   :  { %1181 = vrot.lane.b32.xlu0 %v1095_v23, %s4121_s24  ;;  %1137 = vrot.lane.b32.xlu1 %v1055_v56, %s4119_s22  ;;  %v4009_v23 = vld [vmem:[%s5817_s3 + $0x324] ss:$8 sps:$4 sm:$0xff]  }
 0x201   :  { %1162 = vrot.lane.b32.xlu0 %v1079_v34, %s4120_s0  ;;  %1139 = vrot.lane.b32.xlu1 %v1058_v59, %s4119_s22  ;;  %v3981_v59 = vld [vmem:[%s5817_s3 + $0x220] ss:$8 sps:$4 sm:$0xff]  }
 0x205   :  { %1141 = vrot.lane.b32.xlu0 %v1061_v14, %s4119_s22  ;;  %1164 = vrot.lane.b32.xlu1 %v1082_v45, %s4120_s0  ;;  %v4007_v14 = vld [vmem:[%s5817_s3 + $0x320] ss:$8 sps:$4 sm:$0xff]  }
 0x209   :  { %1175 = vrot.lane.b32.xlu0 %v1089_v21, %s4121_s24  ;;  %1185 = vrot.lane.b32.xlu1 %v1100_v36, %s4121_s24 }
 0x20d   :  { %1202 = vrot.lane.b32.xlu0 %v1110_v44, %s4115_s23  ;;  %1200 = vrot.lane.b32.xlu1 %v1107_v62, %s4115_s23 }
 0x211   :  { %1204 = vrot.lane.b32.xlu0 %v1112_v0, %s4115_s23  ;;  %1179 = vrot.lane.b32.xlu1 %v1093_v5, %s4121_s24 }
 0x215   :  { %1183 = vrot.lane.b32.xlu0 %v1097_v24, %s4121_s24  ;;  %1206 = vrot.lane.b32.xlu1 %v1114_v7, %s4115_s23 }
 0x219   :  { %1210 = vrot.lane.b32.xlu0 %v1118_v11, %s4115_s23  ;;  %1208 = vrot.lane.b32.xlu1 %v1116_v16, %s4115_s23  ;;  %v3995_v16 = vld [vmem:[%s5817_s3 + $0x2e0] ss:$8 sps:$4 sm:$0xff]  }
 0x21d   :  { %1212 = vrot.lane.b32.xlu0 %v1121_v25, %s4115_s23  ;;  %1187 = vrot.lane.b32.xlu1 %v1103_v41, %s4121_s24 }
 0x221   :  { %1214 = vrot.lane.b32.xlu1 %v1124_v6, %s4115_s23  ;;  %v4000_v6 = vld [vmem:[%s5817_s3 + $0x2d4] ss:$8 sps:$4 sm:$0xff]  }
 0x24b   :  { %v1128_v53 = vpop.permute.xlu0 %1127 }
 0x24c   :  { %v1224_v8 = vsel %vm1143_vm9, %v4918_v10, %v1128_v53  ;;  %v1151_v39 = vpop.permute.xlu1 %1150 }
 0x24d   :  { %1969 = vmatprep.mubr.bf16.mxu1 %v1224_v8 }
 0x24e   :  { %1970 = vmatmul.mubr.bf16.vlgmr.msra.gmra.mxu1 %v4886_v33  ;;  %v3977_v33 = vld [vmem:[%s5817_s3 + $0x244] ss:$8 sps:$4 sm:$0xff]  }
 0x24f   :  { %2084 = vmatpush1.bf16.msra.mxu1 %v3957_v27 }
 0x250   :  { %2085 = vmatprep.subr.bf16.mxu1 %v3965_v2  ;;  %v3998_v2 = vld [vmem:[%s5817_s3 + $0x2d0] ss:$8 sps:$4 sm:$0xff]  }
 0x253   :  { %2086 = vmatpush1.bf16.msra.mxu1 %v3963_v13  ;;  %v1153_v10 = vpop.permute.xlu0 %1152  ;;  %v1130_v19 = vpop.permute.xlu1 %1129  ;;  %v4006_v13 = vld [vmem:[%s5817_s3 + $0x2c4] ss:$8 sps:$4 sm:$0xff]  }
 0x254   :  { %2087 = vmatprep.subr.bf16.mxu1 %v3971_v47  ;;  %v1144_v42 = vsel %vm1143_vm9, %v1128_v53, %v1130_v19  ;;  %v1167_v15 = vsel %vm1166_vm10, %v1151_v39, %v1153_v10  ;;  %v4004_v19 = vld [vmem:[%s5817_s3 + $0x2c0] ss:$8 sps:$4 sm:$0xff]  }
 0x255   :  { %v1241_v31 = vsel %vm1166_vm10, %v1144_v42, %v1151_v39 }
 0x257   :  { %2088 = vmatpush1.bf16.msra.mxu1 %v3969_v3  ;;  %v5106_v20 = vpop.permute.xlu0 %1173 }
 0x258   :  { %v1258_v32 = vsel %vm1189_vm11, %v1167_v15, %v5106_v20  ;;  %2089 = vmatprep.subr.bf16.mxu1 %v3977_v33 }
 0x259   :  { %2042 = vmatprep.mubr.bf16.mxu0 %v1258_v32 }
 0x25a   :  { %2043 = vmatmul.mubr.bf16.vlgmr.msra.gmra.mxu0 %v1241_v31 }
 0x25b   :  { %2090 = vmatpush1.bf16.msra.mxu1 %v3975_v22  ;;  %2163 = vmatpush1.bf16.msra.mxu0 %v1932_v48  ;;  %v4018_v22 = vld [vmem:[%s5817_s3 + $0x2a4] ss:$8 sps:$4 sm:$0xff]   ;;  %v4016_v48 = vld [vmem:[%s5817_s3 + $0x2a0] ss:$8 sps:$4 sm:$0xff]  }
 0x25c   :  { %2091 = vmatprep.subr.bf16.mxu1 %v3980_v4  ;;  %2164 = vmatprep.subr.bf16.mxu0 %v4003_v30  ;;  %v4122_v30 = vmov 0  }
 0x25f   :  { %2092 = vmatpush1.bf16.msra.mxu1 %v3978_v35  ;;  %v1155_v56 = vpop.permute.xlu0 %1154  ;;  %v1132_v34 = vpop.permute.xlu1 %1131  ;;  %2165 = vmatpush1.bf16.msra.mxu0 %v4001_v37  ;;  %v4024_v37 = vld [vmem:[%s5817_s3 + $0x294] ss:$8 sps:$4 sm:$0xff]  }
 0x260   :  { %v1228_v45 = vsel %vm1143_vm9, %v4929_v57, %v1132_v34  ;;  %2093 = vmatprep.subr.bf16.mxu1 %v3983_v40  ;;  %2166 = vmatprep.subr.bf16.mxu0 %v4009_v23  ;;  %v3984_v57 = vld [vmem:[%s5817_s3 + $0x210] ss:$8 sps:$4 sm:$0xff]  }
 0x261   :  { %1979 = vmatprep.mubr.bf16.mxu1 %v1228_v45  ;;  %v4022_v23 = vld [vmem:[%s5817_s3 + $0x290] ss:$8 sps:$4 sm:$0xff]  }
 0x262   :  { %1980 = vmatmul.mubr.bf16.gmra.mxu1 %v4895_v18  ;;  %v4021_v18 = vld [vmem:[%s5817_s3 + $0x304] ss:$8 sps:$4 sm:$0xff]  }
 0x263   :  { %2094 = vmatpush1.bf16.msra.mxu1 %v3981_v59  ;;  %v1134_v21 = vpop.permute.xlu0 %1133  ;;  %v1157_v36 = vpop.permute.xlu1 %1156  ;;  %2167 = vmatpush1.bf16.msra.mxu0 %v4007_v14  ;;  %v4025_v14 = vld [vmem:[%s5817_s3 + $0x280] ss:$8 sps:$4 sm:$0xff]  }
 0x264   :  { %2095 = vmatprep.subr.bf16.mxu1 %v3986_v29  ;;  %2168 = vmatprep.subr.bf16.mxu0 %v4015_v50  ;;  %v1145_v12 = vsel %vm1143_vm9, %v1132_v34, %v1134_v21  ;;  %v1168_v49 = vsel %vm1166_vm10, %v1155_v56, %v1157_v36 }
 0x265   :  { %v1245_v51 = vsel %vm1166_vm10, %v1145_v12, %v1155_v56  ;;  %v4027_v56 = vld [vmem:[%s5817_s3 + $0x284] ss:$8 sps:$4 sm:$0xff]  }
 0x267   :  { %2096 = vmatpush1.bf16.msra.mxu1 %v3984_v57  ;;  %v1136_v44 = vpop.permute.xlu0 %1135  ;;  %v5162_v62 = vpop.permute.xlu1 %1177  ;;  %2169 = vmatpush1.bf16.msra.mxu0 %v4013_v55 }
 0x268   :  { %v1232_v0 = vsel %vm1143_vm9, %v4965_v60, %v1136_v44  ;;  %v1262_v5 = vsel %vm1189_vm11, %v1168_v49, %v5162_v62  ;;  %2097 = vmatprep.subr.bf16.mxu1 %v3989_v46  ;;  %2170 = vmatprep.subr.bf16.mxu0 %v4021_v18  ;;  %v3990_v60 = vld [vmem:[%s5817_s3 + $0x2f0] ss:$8 sps:$4 sm:$0xff]  }
 0x269   :  { %1989 = vmatprep.mubr.bf16.mxu1 %v1232_v0  ;;  %2052 = vmatprep.mubr.bf16.mxu0 %v1262_v5 }
 0x26a   :  { %1990 = vmatmul.mubr.bf16.gmra.mxu1 %v4963_v54  ;;  %2053 = vmatmul.mubr.bf16.gmra.mxu0 %v1245_v51 }
 0x26b   :  { %2098 = vmatpush1.bf16.msra.mxu1 %v3987_v63  ;;  %v1161_v24 = vpop.permute.xlu0 %1160  ;;  %v1159_v7 = vpop.permute.xlu1 %1158  ;;  %2171 = vmatpush1.bf16.msra.mxu0 %v4019_v38 }
 0x26c   :  { %2099 = vmatprep.subr.bf16.mxu1 %v3992_v1  ;;  %v1169_v52 = vsel %vm1166_vm10, %v1159_v7, %v1161_v24 }
 0x26f   :  { %2100 = vmatpush2.bf16.msra.mxu1 %v3990_v60  ;;  %v5186_v11 = vpop.permute.xlu0 %1181  ;;  %v1138_v54 = vpop.permute.xlu1 %1137 }
 0x270   :  { %v1146_v25 = vsel %vm1143_vm9, %v1136_v44, %v1138_v54  ;;  %v1266_v41 = vsel %vm1189_vm11, %v1169_v52, %v5186_v11  ;;  %2101 = vmatprep.subr.bf16.mxu1 %v3997_v9 }
 0x271   :  { %2062 = vmatprep.mubr.bf16.mxu0 %v1266_v41  ;;  %v1249_v53 = vsel %vm1166_vm10, %v1146_v25, %v1159_v7 }
 0x272   :  { %2063 = vmatmul.mubr.bf16.gmra.mxu0 %v1249_v53 }
 0x273   :  { %2102 = vmatpush2.bf16.msra.mxu1 %v3995_v16  ;;  %v1163_v27 = vpop.permute.xlu0 %1162  ;;  %v1140_v8 = vpop.permute.xlu1 %1139 }
 0x274   :  { %v1236_v39 = vsel %vm1143_vm9, %v5005_v28, %v1140_v8  ;;  %2103 = vmatprep.subr.bf16.mxu1 %v4000_v6  ;;  %v4012_v28 = vld [vmem:[%s5817_s3 + $0x2b4] ss:$8 sps:$4 sm:$0xff]  }
 0x275   :  { %1999 = vmatprep.mubr.bf16.mxu1 %v1236_v39 }
 0x276   :  { %2000 = vmatmul.mubr.bf16.gmra.mxu1 %v4995_v17  ;;  %v4010_v17 = vld [vmem:[%s5817_s3 + $0x2b0] ss:$8 sps:$4 sm:$0xff]   ;;  %s4123_s3 = smov 112  }
 0x277   :  { %2104 = vmatpush2.bf16.msra.mxu1 %v3998_v2  ;;  %v1142_v47 = vpop.permute.xlu0 %1141  ;;  %v1165_v10 = vpop.permute.xlu1 %1164 }
 0x278   :  { %2105 = vmatprep.subr.bf16.mxu1 %v4006_v13  ;;  %v1147_v3 = vsel %vm1143_vm9, %v1140_v8, %v1142_v47  ;;  %v1170_v33 = vsel %vm1166_vm10, %v1163_v27, %v1165_v10 }
 0x279   :  { %v1253_v32 = vsel %vm1166_vm10, %v1147_v3, %v1163_v27 }
 0x27b   :  { %2106 = vmatpush2.bf16.msra.mxu1 %v4004_v19  ;;  %v1176_v26 = vpop.permute.xlu0 %1175  ;;  %v1186_v42 = vpop.permute.xlu1 %1185 }
 0x27c   :  { %v1270_v15 = vsel %vm1189_vm11, %v1170_v33, %v1186_v42  ;;  %2107 = vmatprep.subr.bf16.mxu1 %v4012_v28  ;;  %v1190_v50 = vsel %vm1189_vm11, %v5106_v20, %v1176_v26 }
 0x27d   :  { %2072 = vmatprep.mubr.bf16.mxu0 %v1270_v15 }
 0x27e   :  { %2073 = vmatmul.mubr.bf16.gmra.mxu0 %v1253_v32 }
 0x27f   :  { %2108 = vmatpush2.bf16.msra.mxu1 %v4010_v17  ;;  %v1201_v4 = vpop.permute.xlu1 %1200  ;;  %2188 = vmatprep.mubr.bf16.mxu0 %v4122_v30  ;;  %v1203_v31 = vpop.permute.xlu0 %1202 }
 0x280   :  { %2109 = vmatprep.subr.bf16.mxu1 %v4018_v22  ;;  %v1274_v35 = vsel %vm246_vm6, %v1176_v26, %v1201_v4  ;;  %v1217_v34 = vsel %vm246_vm6, %v1201_v4, %v1203_v31 }
 0x281   :  { %2115 = vmatprep.mubr.bf16.mxu1 %v1274_v35 }
 0x283   :  { %2110 = vmatpush2.bf16.msra.mxu1 %v4016_v48  ;;  %v1180_v40 = vpop.permute.xlu1 %1179  ;;  %v1205_v59 = vpop.permute.xlu0 %1204 }
 0x284   :  { %2111 = vmatprep.subr.bf16.mxu1 %v4024_v37  ;;  %v1278_v57 = vsel %vm246_vm6, %v1180_v40, %v1205_v59  ;;  %v1191_v12 = vsel %vm1189_vm11, %v5162_v62, %v1180_v40 }
 0x286   :  { %3563 = vmatmul.mubr.msk.bf16.vlgmr.msra.gmra.mxu0 %vm1918_vm12, %v1217_v34 }
 0x287   :  { %2112 = vmatpush2.bf16.msra.mxu1 %v4022_v23  ;;  %2198 = vmatprep.mubr.bf16.mxu0 %v4122_v30  ;;  %v1207_v45 = vpop.permute.xlu1 %1206  ;;  %v1184_v29 = vpop.permute.xlu0 %1183 }
 0x288   :  { %2113 = vmatprep.subr.bf16.mxu1 %v4027_v56  ;;  %v1218_v21 = vsel %vm246_vm6, %v1205_v59, %v1207_v45  ;;  %v1192_v38 = vsel %vm1189_vm11, %v5186_v11, %v1184_v29 }
 0x28b   :  { %2114 = vmatpush2.bf16.msra.mxu1 %v4025_v14  ;;  %v1209_v36 = vpop.permute.xlu1 %1208  ;;  %v1211_v55 = vpop.permute.xlu0 %1210 }
 0x28c   :  { %v1219_v18 = vsel %vm246_vm6, %v1209_v36, %v1211_v55  ;;  %v1282_v20 = vsel %vm246_vm6, %v1184_v29, %v1209_v36 }
 0x28e   :  { %2116 = vmatmul.mubr.bf16.vlgmr.msra.gmra.mxu1 %v1190_v50  ;;  %3564 = vmatmul.mubr.msk.bf16.gmra.mxu0 %vm1918_vm12, %v1218_v21 }
 0x28f   :  { %2125 = vmatprep.mubr.bf16.mxu1 %v1278_v57  ;;  %2208 = vmatprep.mubr.bf16.mxu0 %v4122_v30  ;;  %v1188_v46 = vpop.permute.xlu1 %1187  ;;  %v1213_v44 = vpop.permute.xlu0 %1212 }
 0x290   :  { %v1286_v0 = vsel %vm246_vm6, %v1188_v46, %v1213_v44  ;;  %v1193_v62 = vsel %vm1189_vm11, %v1186_v42, %v1188_v46 }
 0x293   :  { %v1215_v49 = vpop.permute.xlu1 %1214 }
 0x294   :  { %v1220_v63 = vsel %vm246_vm6, %v1213_v44, %v1215_v49 }
 0x296   :  { %2126 = vmatmul.mubr.bf16.gmra.mxu1 %v1191_v12  ;;  %3565 = vmatmul.mubr.msk.bf16.gmra.mxu0 %vm1918_vm12, %v1219_v18 }
 0x297   :  { %2135 = vmatprep.mubr.bf16.mxu1 %v1282_v20  ;;  %2218 = vmatprep.mubr.bf16.mxu0 %v4122_v30 }
 0x29e   :  { %2136 = vmatmul.mubr.bf16.gmra.mxu1 %v1192_v38  ;;  %3566 = vmatmul.mubr.msk.bf16.gmra.mxu0 %vm1918_vm12, %v1220_v63 }
 0x29f   :  { %2145 = vmatprep.mubr.bf16.mxu1 %v1286_v0 }
 0x2a6   :  { %2146 = vmatmul.mubr.bf16.gmra.mxu1 %v1193_v62 }
 0x30e   :  { %v1971_v5 = vpop.f32.mrf.mxu1 }
 0x310   :  { %v1973_v1 = vpop.f32.mrf.mxu1 }
 0x312   :  { %v1975_v51 = vpop.f32.mrf.mxu1 }
 0x314   :  { %v1977_v7 = vpop.f32.mrf.mxu1 }
 0x31a   :  { %v2044_v24 = vpop.f32.mrf.mxu0 }
 0x31b   :  { %v2045_v35 = vadd.f32 %v2044_v24, %v1971_v5 }
 0x31c   :  { %v2046_v60 = vpop.f32.mrf.mxu0 }
 0x31d   :  { %v2047_v23 = vadd.f32 %v2046_v60, %v1973_v1 }
 0x31e   :  { %v2048_v52 = vpop.f32.mrf.mxu0 }
 0x31f   :  { %v2049_v14 = vadd.f32 %v2048_v52, %v1975_v51 }
 0x320   :  { %v2050_v11 = vpop.f32.mrf.mxu0 }
 0x321   :  { %v2051_v21 = vadd.f32 %v2050_v11, %v1977_v7 }
 0x322   :  { %v5257_v9 = vpop.f32.mrf.mxu1 }
 0x324   :  { %v5259_v54 = vpop.f32.mrf.mxu1 }
 0x326   :  { %v1985_v16 = vpop.f32.mrf.mxu1 }
 0x328   :  { %v1987_v6 = vpop.f32.mrf.mxu1 }
 0x32a   :  { %v5261_v25 = vpop.f32.mrf.mxu0  ;;  %v1991_v8 = vpop.f32.mrf.mxu1 }
 0x32c   :  { %v5263_v41 = vpop.f32.mrf.mxu0  ;;  %v1993_v13 = vpop.f32.mrf.mxu1 }
 0x32e   :  { %v2058_v53 = vpop.f32.mrf.mxu0  ;;  %v5267_v10 = vpop.f32.mrf.mxu1 }
 0x32f   :  { %v2059_v5 = vadd.f32 %v2058_v53, %v1985_v16 }
 0x330   :  { %v2060_v27 = vpop.f32.mrf.mxu0  ;;  %v5271_v28 = vpop.f32.mrf.mxu1 }
 0x331   :  { %v2061_v11 = vadd.f32 %v2060_v27, %v1987_v6 }
 0x332   :  { %v2064_v2 = vpop.f32.mrf.mxu0 }
 0x334   :  { %v2066_v39 = vpop.f32.mrf.mxu0 }
 0x335   :  { %v2067_v27 = vadd.f32 %v2066_v39, %v1993_v13 }
 0x336   :  { %v5265_v47 = vpop.f32.mrf.mxu0  ;;  %v5275_v33 = vpop.f32.mrf.mxu1 }
 0x338   :  { %v5269_v19 = vpop.f32.mrf.mxu0  ;;  %v5281_v17 = vpop.f32.mrf.mxu1 }
 0x339   :  { %v2071_v39 = vadd.f32 %v5269_v19, %v5271_v28 }
 0x33a   :  { %v5285_v32 = vpop.f32.mrf.mxu1 }
 0x33c   :  { %v5287_v30 = vpop.f32.mrf.mxu1 }
 0x33e   :  { %v5273_v3 = vpop.f32.mrf.mxu0 }
 0x340   :  { %v5277_v26 = vpop.f32.mrf.mxu0 }
 0x341   :  { %v2077_v28 = vadd.f32 %v5277_v26, %v5281_v17 }
 0x342   :  { %v5279_v42 = vpop.f32.mrf.mxu0 }
 0x344   :  { %v5283_v15 = vpop.f32.mrf.mxu0 }
 0x346   :  { %v2190_v22 = vpop.f32.mrf.mxu0 }
 0x348   :  { %v2192_v4 = vpop.f32.mrf.mxu0 }
 0x34a   :  { %v2194_v48 = vpop.f32.mrf.mxu0 }
 0x34c   :  { %v2196_v31 = vpop.f32.mrf.mxu0 }
 0x34e   :  { %v2117_v37 = vpop.f32.mrf.mxu1  ;;  %v5289_v40 = vpop.f32.mrf.mxu0 }
 0x34f   :  { %v2118_v56 = vadd.f32 %v2117_v37, %v2045_v35 }
 0x350   :  { %v2119_v34 = vpop.f32.mrf.mxu1  ;;  %v5291_v59 = vpop.f32.mrf.mxu0 }
 0x351   :  { %v2120_v45 = vadd.f32 %v2119_v34, %v2047_v23  ;;  %v5293_v36 = vadd.f32 %v2190_v22, %v2118_v56  ;;  %v2055_v56 = vadd.f32 %v5261_v25, %v5257_v9 }
 0x352   :  { %v2121_v29 = vpop.f32.mrf.mxu1  ;;  %v2204_v50 = vpop.f32.mrf.mxu0 }
 0x353   :  { %v2122_v57 = vadd.f32 %v2121_v29, %v2049_v14  ;;  %v5295_v18 = vadd.f32 %v2192_v4, %v2120_v45  ;;  %v2245_v63 = vrot.slane %v5293_v36, 2  ;;  %v2069_v45 = vadd.f32 %v5265_v47, %v5267_v10 }
 0x354   :  { %v2123_v55 = vpop.f32.mrf.mxu1  ;;  %v2206_v46 = vpop.f32.mrf.mxu0  ;;  %v2057_v29 = vadd.f32 %v5263_v41, %v5259_v54 }
 0x355   :  { %v5297_v12 = vadd.f32 %v2194_v48, %v2122_v57  ;;  %v2124_v20 = vadd.f32 %v2123_v55, %v2051_v21  ;;  %v2248_v1 = vrot.slane %v5295_v18, 2  ;;  %v2065_v48 = vadd.f32 %v2064_v2, %v1991_v8 }
 0x356   :  { %v2127_v49 = vpop.f32.mrf.mxu1  ;;  %v2210_v44 = vpop.f32.mrf.mxu0 }
 0x357   :  { %v2246_v38 = vrot.slane %v5297_v12, 2  ;;  %v5301_v0 = vadd.f32 %v2196_v31, %v2124_v20  ;;  %v2128_v13 = vadd.f32 %v2127_v49, %v2055_v56 }
 0x358   :  { %v2129_v62 = vpop.f32.mrf.mxu1  ;;  %v2212_v7 = vpop.f32.mrf.mxu0 }
 0x359   :  { %v2249_v51 = vrot.slane %v5301_v0, 2  ;;  %v2247_v24 = vsel %vm90_vm2, %v2245_v63, %v2246_v38  ;;  %v2130_v47 = vadd.f32 %v2129_v62, %v2057_v29  ;;  %v2201_v49 = vadd.f32 %v5289_v40, %v2128_v13 }
 0x35a   :  { %v2131_v60 = vpop.f32.mrf.mxu1  ;;  %v5311_v52 = vmax.f32 %v5293_v36, %v2247_v24  ;;  %v2214_v35 = vpop.f32.mrf.mxu0 }
 0x35b   :  { %v2132_v22 = vadd.f32 %v2131_v60, %v2059_v5  ;;  %v2250_v16 = vsel %vm90_vm2, %v2248_v1, %v2249_v51 }
 0x35c   :  { %2327 = vrot.lane.b32.xlu0 %v5311_v52, %s4123_s3  ;;  %v2133_v53 = vpop.f32.mrf.mxu1  ;;  %v5321_v4 = vmax.f32 %v5295_v18, %v2250_v16  ;;  %v4029_v18 = vld [vmem:[%s5819_s5 + $0x38] sm:$0xff]  }
 0x35d   :  { %v2134_v31 = vadd.f32 %v2133_v53, %v2061_v11  ;;  %v5325_v37 = vadd.f32 %v2204_v50, %v2132_v22  ;;  %v2216_v50 = vpop.f32.mrf.mxu0  ;;  %v2203_v11 = vadd.f32 %v5291_v59, %v2130_v47 }
 0x35e   :  { %2329 = vrot.lane.b32.xlu1 %v5321_v4, %s4123_s3  ;;  %v2137_v6 = vpop.f32.mrf.mxu1 }
 0x35f   :  { %v2138_v23 = vadd.f32 %v2137_v6, %v2065_v48  ;;  %v5329_v34 = vadd.f32 %v2206_v46, %v2134_v31  ;;  %v2255_v57 = vrot.slane %v5325_v37, 2  ;;  %v2075_v46 = vadd.f32 %v5273_v3, %v5275_v33  ;;  %v2220_v5 = vpop.f32.mrf.mxu0 }
 0x360   :  { %v2139_v14 = vpop.f32.mrf.mxu1  ;;  %v2253_v56 = vrot.slane %v2203_v11, 2 }
 0x361   :  { %v2211_v8 = vadd.f32 %v2210_v44, %v2138_v23  ;;  %v2140_v2 = vadd.f32 %v2139_v14, %v2067_v27  ;;  %v2257_v10 = vrot.slane %v5329_v34, 2  ;;  %v2222_v48 = vpop.f32.mrf.mxu0 }
 0x362   :  { %v2141_v21 = vpop.f32.mrf.mxu1 }
 0x363   :  { %v2259_v9 = vrot.slane %v2211_v8, 2  ;;  %v2213_v25 = vadd.f32 %v2212_v7, %v2140_v2  ;;  %v2142_v55 = vadd.f32 %v2141_v21, %v2069_v45  ;;  %v2254_v21 = vsel %vm90_vm2, %v2249_v51, %v2253_v56 }
 0x364   :  { %v2143_v20 = vpop.f32.mrf.mxu1 }
 0x365   :  { %v2261_v44 = vrot.slane %v2213_v25, 2  ;;  %v2215_v54 = vadd.f32 %v2214_v35, %v2142_v55  ;;  %v2144_v41 = vadd.f32 %v2143_v20, %v2071_v39  ;;  %v2260_v19 = vsel %vm90_vm2, %v2255_v57, %v2259_v9 }
 0x366   :  { %v2147_v24 = vpop.f32.mrf.mxu1  ;;  %v5348_v3 = vmax.f32 %v5325_v37, %v2260_v19  ;;  %v2251_v35 = vrot.slane %v2201_v49, 2  ;;  %v2258_v20 = vsel %vm90_vm2, %v2253_v56, %v2257_v10 }
 0x367   :  { %v2263_v33 = vrot.slane %v2215_v54, 2  ;;  %v2217_v62 = vadd.f32 %v2216_v50, %v2144_v41  ;;  %v2148_v7 = vadd.f32 %v2147_v24, %v2075_v46  ;;  %v2262_v60 = vsel %vm90_vm2, %v2257_v10, %v2261_v44  ;;  %v2224_v46 = vpop.f32.mrf.mxu0  ;;  %v4033_v24 = vld [vmem:[%s5819_s5 + $0x28] sm:$0xff]  }
 0x368   :  { %v2149_v22 = vpop.f32.mrf.mxu1  ;;  %v5355_v16 = vmax.f32 %v5329_v34, %v2262_v60  ;;  %v2252_v39 = vsel %vm90_vm2, %v2246_v38, %v2251_v35  ;;  %v2079_v50 = vadd.f32 %v5279_v42, %v5285_v32  ;;  %v2081_v38 = vadd.f32 %v5283_v15, %v5287_v30  ;;  %v4037_v60 = vld [vmem:[%s5819_s5 + $0x18] sm:$0xff]  }
 0x369   :  { %v2265_v26 = vrot.slane %v2217_v62, 2  ;;  %v2221_v17 = vadd.f32 %v2220_v5, %v2148_v7  ;;  %v2150_v40 = vadd.f32 %v2149_v22, %v2077_v28  ;;  %v2264_v53 = vsel %vm90_vm2, %v2259_v9, %v2263_v33  ;;  %v2226_v47 = vpop.f32.mrf.mxu0  ;;  %v4032_v5 = vld [vmem:[%s5819_s5 + $0x68] sm:$0xff]   ;;  %v4036_v7 = vld [vmem:[%s5819_s5 + $0x58] sm:$0xff]   ;;  %v4039_v22 = vld [vmem:[%s5819_s5 + $0x10] sm:$0xff]  }
 0x36a   :  { %v5358_v31 = vmax.f32 %v2211_v8, %v2264_v53  ;;  %v2151_v2 = vpop.f32.mrf.mxu1  ;;  %v5393_v42 = vmax.f32 %v5301_v0, %v2254_v21  ;;  %v2256_v30 = vsel %vm90_vm2, %v2251_v35, %v2255_v57  ;;  %v5416_v37 = vmax.f32 %v2203_v11, %v2258_v20  ;;  %v4038_v11 = vld [vmem:[%s5819_s5 + $0x50] sm:$0xff]  }
 0x36b   :  { %v2267_v6 = vrot.slane %v2221_v17, 2  ;;  %v2223_v27 = vadd.f32 %v2222_v48, %v2150_v40  ;;  %v2266_v23 = vsel %vm90_vm2, %v2261_v44, %v2265_v26  ;;  %v2152_v55 = vadd.f32 %v2151_v2, %v2079_v50 }
 0x36c   :  { %2343 = vrot.lane.b32.xlu0 %v5358_v31, %s4123_s3  ;;  %v5363_v59 = vmax.f32 %v2213_v25, %v2266_v23  ;;  %v2153_v9 = vpop.f32.mrf.mxu1  ;;  %v5386_v25 = vmax.f32 %v5297_v12, %v2252_v39  ;;  %v5411_v44 = vmax.f32 %v2201_v49, %v2256_v30  ;;  %v4031_v49 = vld [vmem:[%s5819_s5 + $0x30] sm:$0xff]   ;;  %v4043_v39 = vld [vmem:[%s5819_s5 + $0x40] sm:$0xff]  }
 0x36d   :  { %v2269_v14 = vrot.slane %v2223_v27, 2  ;;  %v2268_v45 = vsel %vm90_vm2, %v2263_v33, %v2267_v6  ;;  %v2154_v32 = vadd.f32 %v2153_v9, %v2081_v38  ;;  %v2225_v51 = vadd.f32 %v2224_v46, %v2152_v55  ;;  %v4034_v33 = vld [vmem:[%s5819_s5 + $0x60] sm:$0xff]   ;;  %v4046_v46 = vld [vmem:[%s5819_s5 + $0xf0] sm:$0xff]  }
 0x36e   :  { %2345 = vrot.lane.b32.xlu1 %v5363_v59, %s4123_s3  ;;  %v5368_v8 = vmax.f32 %v2215_v54, %v2268_v45 }
 0x36f   :  { %v2270_v29 = vsel %vm90_vm2, %v2265_v26, %v2269_v14  ;;  %v2227_v12 = vadd.f32 %v2226_v47, %v2154_v32  ;;  %v2271_v15 = vrot.slane %v2225_v51, 2  ;;  %v4040_v26 = vld [vmem:[%s5819_s5 + $0x48] sm:$0xff]  }
 0x370   :  { %2347 = vrot.lane.b32.xlu0 %v5368_v8, %s4123_s3  ;;  %v5376_v13 = vmax.f32 %v2217_v62, %v2270_v29  ;;  %v4035_v62 = vld [vmem:[%s5819_s5 + $0x20] sm:$0xff]   ;;  %v4042_v29 = vld [vmem:[%s5819_s5 + $0xf8] sm:$0xff]  }
 0x371   :  { %v2273_v0 = vrot.slane %v2227_v12, 2  ;;  %v2272_v54 = vsel %vm90_vm2, %v2267_v6, %v2271_v15  ;;  %v2293_v10 = vsel %vm90_vm2, %v2271_v15, %v2245_v63  ;;  %v4028_v63 = vld [vmem:[%s5819_s5 + $0x78] sm:$0xff]   ;;  %v2433_v6 = vld [vmem:[%s5818_s4] sm:$0x3]  ;;  %3659 = vmatprep.subr.bf16.mxu1 %v4042_v29 }
 0x372   :  { %2349 = vrot.lane.b32.xlu1 %v5376_v13, %s4123_s3  ;;  %v5421_v34 = vmax.f32 %v2221_v17, %v2272_v54  ;;  %v5435_v28 = vmax.f32 %v2225_v51, %v2293_v10  ;;  %3637 = vmatprep.subr.bf16.mxu0 %v4028_v63  ;;  %v4041_v17 = vld [vmem:[%s5819_s5 + $0x8] sm:$0xff]   ;;  %v5496_v45 = vrot.slane %v2433_v6, %v985_v61  ;;  %v4045_v61 = vld [vmem:[%s5819_s5] sm:$0xff]  }
 0x373   :  { %v2274_v57 = vsel %vm90_vm2, %v2269_v14, %v2273_v0  ;;  %v2294_v19 = vsel %vm90_vm2, %v2273_v0, %v2248_v1  ;;  %v4030_v1 = vld [vmem:[%s5819_s5 + $0x70] sm:$0xff]   ;;  %3638 = vmatpush3.bf16.msra.mxu0 %v4029_v18  ;;  %vm4126_vm2 = vmmov 0  }
 0x374   :  { %2331 = vrot.lane.b32.xlu0 %v5386_v25, %s4123_s3  ;;  %v5428_v41 = vmax.f32 %v2223_v27, %v2274_v57  ;;  %v5439_v36 = vmax.f32 %v2227_v12, %v2294_v19  ;;  %3639 = vmatprep.subr.bf16.mxu0 %v4030_v1 }
 0x376   :  { %2333 = vrot.lane.b32.xlu1 %v5393_v42, %s4123_s3 }
 0x377   :  { %3640 = vmatpush3.bf16.msra.mxu0 %v4031_v49 }
 0x378   :  { %2392 = vrot.lane.b32.xlu0 %v5358_v31, %s4124_s28  ;;  %3641 = vmatprep.subr.bf16.mxu0 %v4032_v5  ;;  %v4051_v5 = vld [vmem:[%s5819_s5 + $0xa8] sm:$0xff]  }
 0x37a   :  { %2394 = vrot.lane.b32.xlu1 %v5368_v8, %s4124_s28 }
 0x37b   :  { %3642 = vmatpush3.bf16.msra.mxu0 %v4033_v24 }
 0x37c   :  { %2384 = vrot.lane.b32.xlu0 %v5311_v52, %s4124_s28  ;;  %3643 = vmatprep.subr.bf16.mxu0 %v4034_v33 }
 0x37e   :  { %2386 = vrot.lane.b32.xlu1 %v5386_v25, %s4124_s28 }
 0x37f   :  { %3644 = vmatpush3.bf16.msra.mxu0 %v4035_v62 }
 0x380   :  { %2335 = vrot.lane.b32.xlu0 %v5411_v44, %s4123_s3  ;;  %3645 = vmatprep.subr.bf16.mxu0 %v4036_v7  ;;  %v4080_v7 = vld [vmem:[%s5821_s7 + $0x28] sm:$0xff]  }
 0x382   :  { %2337 = vrot.lane.b32.xlu1 %v5416_v37, %s4123_s3 }
 0x383   :  { %3646 = vmatpush3.bf16.msra.mxu0 %v4037_v60 }
 0x384   :  { %2351 = vrot.lane.b32.xlu0 %v5421_v34, %s4123_s3  ;;  %3647 = vmatprep.subr.bf16.mxu0 %v4038_v11 }
 0x386   :  { %2353 = vrot.lane.b32.xlu1 %v5428_v41, %s4123_s3 }
 0x387   :  { %3648 = vmatpush3.bf16.msra.mxu0 %v4039_v22  ;;  %v5548_v22 = vrot.slane %v2433_v6, %v989_v58 }
 0x388   :  { %2355 = vrot.lane.b32.xlu0 %v5435_v28, %s4123_s3  ;;  %3649 = vmatprep.subr.bf16.mxu0 %v4040_v26 }
 0x38a   :  { %2357 = vrot.lane.b32.xlu1 %v5439_v36, %s4123_s3 }
 0x38b   :  { %3650 = vmatpush3.bf16.msra.mxu0 %v4041_v17  ;;  %v4054_v17 = vld [vmem:[%s5819_s5 + $0xe0] sm:$0xff]  }
 0x38c   :  { %3651 = vmatprep.subr.bf16.mxu0 %v4043_v39  ;;  %v4062_v39 = vld [vmem:[%s5819_s5 + $0xd0] sm:$0xff]  }
 0x38f   :  { %3652 = vmatpush3.bf16.msra.mxu0 %v4045_v61 }
 0x3ce   :  { %v2328_v40 = vpop.permute.xlu0 %2327 }
 0x3d0   :  { %v2330_v53 = vpop.permute.xlu1 %2329 }
 0x3d1   :  { %v2360_v14 = vsel %vm2359_vm13, %v2328_v40, %v2330_v53 }
 0x3d2   :  { %v2417_v21 = vmax.f32 %v5311_v52, %v2360_v14  ;;  %v4047_v52 = vld [vmem:[%s5819_s5 + $0xb0] sm:$0xff]  }
 0x3d4   :  { %v2445_v12 = vadd.f32 %v5496_v45, %v2417_v21 }
 0x3d6   :  { %v2461_v19 = vmax.f32 %v2445_v12, 0.0  ;;  %v4125_v12 = vmov 0.0  }
 0x3de   :  { %v2344_v48 = vpop.permute.xlu0 %2343 }
 0x3e0   :  { %v5485_v35 = vpop.permute.xlu1 %2345 }
 0x3e1   :  { %v2364_v27 = vsel %vm2359_vm13, %v2344_v48, %v5485_v35  ;;  %v4055_v48 = vld [vmem:[%s5819_s5 + $0xa0] sm:$0xff]  }
 0x3e2   :  { %v2425_v23 = vmax.f32 %v5358_v31, %v2364_v27  ;;  %v2348_v56 = vpop.permute.xlu0 %2347  ;;  %v4044_v31 = vld [vmem:[%s5819_s5 + $0xb8] sm:$0xff]  }
 0x3e3   :  { %3660 = vmatpush3.bf16.msra.mxu1 %v4044_v31 }
 0x3e4   :  { %v2350_v2 = vpop.permute.xlu1 %2349  ;;  %v2453_v9 = vadd.f32 %v5496_v45, %v2425_v23  ;;  %3661 = vmatprep.subr.bf16.mxu1 %v4046_v46  ;;  %v4058_v23 = vld [vmem:[%s5819_s5 + $0xd8] sm:$0xff]   ;;  %v4070_v46 = vld [vmem:[%s5819_s5 + $0xc0] sm:$0xff]  }
 0x3e5   :  { %v2365_v50 = vsel %vm2359_vm13, %v2348_v56, %v2350_v2  ;;  %v4059_v56 = vld [vmem:[%s5819_s5 + $0x98] sm:$0xff]  }
 0x3e6   :  { %v2427_v38 = vmax.f32 %v5368_v8, %v2365_v50  ;;  %v2332_v55 = vpop.permute.xlu0 %2331  ;;  %v4048_v8 = vld [vmem:[%s5819_s5 + $0x178] sm:$0xff]   ;;  %v2469_v15 = vmax.f32 %v2453_v9, 0.0  ;;  %v4066_v50 = vld [vmem:[%s5819_s5 + $0xc8] sm:$0xff]  }
 0x3e7   :  { %3662 = vmatpush3.bf16.msra.mxu1 %v4047_v52  ;;  %3681 = vmatprep.subr.bf16.mxu0 %v4048_v8 }
 0x3e8   :  { %v2455_v32 = vadd.f32 %v5496_v45, %v2427_v38  ;;  %v2334_v51 = vpop.permute.xlu1 %2333  ;;  %v4067_v38 = vld [vmem:[%s5819_s5 + $0x88] sm:$0xff]  }
 0x3e9   :  { %v2361_v47 = vsel %vm2359_vm13, %v2332_v55, %v2334_v51 }
 0x3ea   :  { %v2471_v30 = vmax.f32 %v2455_v32, 0.0  ;;  %v2419_v0 = vmax.f32 %v5386_v25, %v2361_v47  ;;  %v2393_v20 = vpop.permute.xlu0 %2392  ;;  %v4050_v25 = vld [vmem:[%s5819_s5 + $0xe8] sm:$0xff]   ;;  %v4071_v47 = vld [vmem:[%s5819_s5 + $0x80] sm:$0xff]  }
 0x3eb   :  { %3663 = vmatprep.subr.bf16.mxu1 %v4050_v25 }
 0x3ec   :  { %v5527_v54 = vpack.c.bf16 %v2471_v30, %v2469_v15  ;;  %v2447_v57 = vadd.f32 %v5496_v45, %v2419_v0  ;;  %v2395_v10 = vpop.permute.xlu1 %2394  ;;  %3664 = vmatpush3.bf16.msra.mxu1 %v4051_v5 }
 0x3ed   :  { %v2414_v40 = vsel %vm2408_vm0, %v2350_v2, %v2395_v10  ;;  %3665 = vmatprep.subr.bf16.mxu1 %v4054_v17 }
 0x3ee   :  { %v2463_v63 = vmax.f32 %v2447_v57, 0.0  ;;  %v2385_v18 = vpop.permute.xlu0 %2384  ;;  %v2525_v1 = vrot.slane %v5527_v54, 2  ;;  %v2556_v11 = vshll.u32 %v5527_v54, 16  ;;  %v2428_v6 = vmax.f32 %v5376_v13, %v2414_v40 }
 0x3ef   :  { %v2409_v49 = vsel %vm2408_vm0, %v2330_v53, %v2385_v18  ;;  %v2532_v8 = vrot.slane %v5527_v54, 4  ;;  %v2539_v15 = vrot.slane %v5527_v54, 6 }
 0x3f0   :  { %v2477_v24 = vpack.c.bf16 %v2463_v63, %v2461_v19  ;;  %v2418_v33 = vmax.f32 %v5321_v4, %v2409_v49  ;;  %2527 = vrot.lane.b32.xlu0 %v2525_v1, %s4115_s23  ;;  %v2387_v62 = vpop.permute.xlu1 %2386  ;;  %3666 = vmatpush3.bf16.msra.mxu1 %v4055_v48  ;;  %v2456_v13 = vadd.f32 %v5548_v22, %v2428_v6 }
 0x3f1   :  { %v2410_v60 = vsel %vm2408_vm0, %v2334_v51, %v2387_v62  ;;  %3667 = vmatprep.subr.bf16.mxu1 %v4058_v23 }
 0x3f2   :  { %v2420_v26 = vmax.f32 %v5393_v42, %v2410_v60  ;;  %v2487_v4 = vrot.slane %v2477_v24, 2  ;;  %v5557_v53 = vsel %vm5540_vm1, %v2477_v24, %v2556_v11  ;;  %v2446_v43 = vadd.f32 %v5548_v22, %v2418_v33  ;;  %v2336_v10 = vpop.permute.xlu0 %2335 }
 0x3f3   :  { %v2413_v42 = vsel %vm2408_vm0, %v5485_v35, %v2393_v20  ;;  %v2494_v29 = vrot.slane %v2477_v24, 4  ;;  %v2472_v61 = vmax.f32 %v2456_v13, 0.0  ;;  %v2502_v51 = vrot.slane %v2477_v24, 6 }
 0x3f4   :  { %v2448_v58 = vadd.f32 %v5548_v22, %v2420_v26  ;;  %2339 = vrot.lane.b32.xlu0 %v5348_v3, %s4123_s3  ;;  %2489 = vrot.lane.b32.xlu1 %v2487_v4, %s4115_s23  ;;  %v2426_v14 = vmax.f32 %v5363_v59, %v2413_v42  ;;  %v2462_v2 = vmax.f32 %v2446_v43, 0.0  ;;  %v4063_v59 = vld [vmem:[%s5819_s5 + $0x90] sm:$0xff]   ;;  %v5620_v57 = vpop.permute.xlu1 %2337 }
 0x3f5   :  { %3668 = vmatpush3.bf16.msra.mxu1 %v4059_v56  ;;  %v2362_v62 = vsel %vm2359_vm13, %v2336_v10, %v5620_v57  ;;  %v4052_v43 = vld [vmem:[%s5819_s5 + $0x170] sm:$0xff]  }
 0x3f6   :  { %v2464_v27 = vmax.f32 %v2448_v58, 0.0  ;;  %v2454_v31 = vadd.f32 %v5548_v22, %v2426_v14  ;;  %3669 = vmatprep.subr.bf16.mxu1 %v4062_v39  ;;  %v2352_v63 = vpop.permute.xlu0 %2351  ;;  %v2421_v40 = vmax.f32 %v5411_v44, %v2362_v62  ;;  %v4057_v39 = vld [vmem:[%s5819_s5 + $0x128] sm:$0xff]   ;;  %v4069_v10 = vld [vmem:[%s5819_s5 + $0x110] sm:$0xff]  }
 0x3f8   :  { %2396 = vrot.lane.b32.xlu0 %v5421_v34, %s4124_s28  ;;  %2341 = vrot.lane.b32.xlu1 %v5355_v16, %s4123_s3  ;;  %v2478_v35 = vpack.c.bf16 %v2464_v27, %v2462_v2  ;;  %v2470_v55 = vmax.f32 %v2454_v31, 0.0  ;;  %v2354_v19 = vpop.permute.xlu1 %2353  ;;  %v4053_v27 = vld [vmem:[%s5819_s5 + $0x130] sm:$0xff]   ;;  %v2449_v23 = vadd.f32 %v5496_v45, %v2421_v40  ;;  %s4127_s3 = smov [#allocation2]  }
 0x3f9   :  { %3670 = vmatpush3.bf16.msra.mxu1 %v4063_v59  ;;  %v2366_v25 = vsel %vm2359_vm13, %v2352_v63, %v2354_v19 }
 0x3fa   :  { %v2495_v21 = vrot.slane %v2478_v35, 4  ;;  %v2488_v9 = vrot.slane %v2478_v35, 2  ;;  %3671 = vmatprep.subr.bf16.mxu1 %v4066_v50  ;;  %v2482_v32 = vpack.c.bf16 %v2472_v61, %v2470_v55  ;;  %v2503_v20 = vrot.slane %v2478_v35, 6  ;;  %v2356_v18 = vpop.permute.xlu0 %2355  ;;  %v4064_v55 = vld [vmem:[%s5819_s5 + $0x158] sm:$0xff]  }
 0x3fb   :  { %v2429_v33 = vmax.f32 %v5421_v34, %v2366_v25  ;;  %v2465_v59 = vmax.f32 %v2449_v23, 0.0 }
 0x3fc   :  { %2496 = vrot.lane.b32.xlu0 %v2494_v29, %s4116_s29  ;;  %2398 = vrot.lane.b32.xlu1 %v5435_v28, %s4124_s28  ;;  %v2533_v52 = vrot.slane %v2482_v32, 4  ;;  %v2526_v30 = vrot.slane %v2482_v32, 2  ;;  %v2540_v0 = vrot.slane %v2482_v32, 6  ;;  %v2358_v54 = vpop.permute.xlu1 %2357 }
 0x3fd   :  { %3672 = vmatpush3.bf16.msra.mxu1 %v4067_v38  ;;  %v2367_v1 = vsel %vm2359_vm13, %v2356_v18, %v2358_v54  ;;  %v2457_v34 = vadd.f32 %v5496_v45, %v2429_v33 }
 0x3fe   :  { %3673 = vmatprep.subr.bf16.mxu1 %v4070_v46  ;;  %v2431_v49 = vmax.f32 %v5435_v28, %v2367_v1  ;;  %v4049_v28 = vld [vmem:[%s5819_s5 + $0x138] sm:$0xff]  }
 0x3ff   :  { %v2473_v56 = vmax.f32 %v2457_v34, 0.0 }
 0x400   :  { %2498 = vrot.lane.b32.xlu1 %v2495_v21, %s4116_s29  ;;  %2491 = vrot.lane.b32.xlu0 %v2488_v9, %s4115_s23  ;;  %v2459_v60 = vadd.f32 %v5496_v45, %v2431_v49 }
 0x401   :  { %3674 = vmatpush3.bf16.msra.mxu1 %v4071_v47  ;;  %v4065_v47 = vld [vmem:[%s5819_s5 + $0x118] sm:$0xff]  }
 0x402   :  { %3722 = vmatprep.subr.bf16.mxu1 %v4125_v12  ;;  %v2475_v58 = vmax.f32 %v2459_v60, 0.0 }
 0x404   :  { %2504 = vrot.lane.b32.xlu1 %v2502_v51, %s4114_s16  ;;  %2388 = vrot.lane.b32.xlu0 %v5411_v44, %s4124_s28  ;;  %v2483_v29 = vpack.c.bf16 %v2475_v58, %v2473_v56 }
 0x406   :  { %v2568_v9 = vshll.u32 %v2483_v29, 16 }
 0x408   :  { %2536 = vrot.lane.b32.xlu1 %v2533_v52, %s4116_s29  ;;  %2534 = vrot.lane.b32.xlu0 %v2532_v8, %s4116_s29  ;;  %v4068_v8 = vld [vmem:[%s5819_s5 + $0x150] sm:$0xff]  }
 0x40c   :  { %2541 = vrot.lane.b32.xlu1 %v2539_v15, %s4114_s16  ;;  %2529 = vrot.lane.b32.xlu0 %v2526_v30, %s4115_s23 }
 0x410   :  { %2390 = vrot.lane.b32.xlu1 %v5348_v3, %s4124_s28  ;;  %2543 = vrot.lane.b32.xlu0 %v2540_v0, %s4114_s16 }
 0x414   :  { %2506 = vrot.lane.b32.xlu1 %v2503_v20, %s4114_s16 }
 0x462   :  { %v5625_v5 = vpop.permute.xlu0 %2527 }
 0x463   :  { %v2548_v24 = vsel %vm246_vm6, %v2482_v32, %v5625_v5 }
 0x464   :  { %v2558_v11 = vshll.u32 %v2548_v24, 16 }
 0x466   :  { %v2340_v26 = vpop.permute.xlu0 %2339  ;;  %v5633_v4 = vpop.permute.xlu1 %2489 }
 0x467   :  { %v2513_v17 = vsel %vm246_vm6, %v2478_v35, %v5633_v4 }
 0x468   :  { %v2584_v48 = vsel %vm5540_vm1, %v2513_v17, %v2558_v11  ;;  %v4076_v17 = vld [vmem:[%s5819_s5 + $0x188] sm:$0xff]  }
 0x469   :  { %3032 = vmatprep.mubr.bf16.mxu0 %v2584_v48 }
 0x46a   :  { %v2397_v42 = vpop.permute.xlu0 %2396  ;;  %3033 = vmatmul.mubr.bf16.vlgmr.msra.gmra.mxu0 %v5557_v53  ;;  %v5648_v6 = vpop.permute.xlu1 %2341  ;;  %v4056_v53 = vld [vmem:[%s5819_s5 + $0x168] sm:$0xff]  }
 0x46b   :  { %3682 = vmatpush3.bf16.msra.mxu0 %v4049_v28  ;;  %v2363_v44 = vsel %vm2359_vm13, %v2340_v26, %v5648_v6  ;;  %v2415_v52 = vsel %vm2408_vm0, %v2354_v19, %v2397_v42  ;;  %v4072_v19 = vld [vmem:[%s5819_s5 + $0x148] sm:$0xff]   ;;  %v4074_v26 = vld [vmem:[%s5819_s5 + $0x140] sm:$0xff]  }
 0x46c   :  { %v2423_v14 = vmax.f32 %v5348_v3, %v2363_v44  ;;  %3683 = vmatprep.subr.bf16.mxu0 %v4052_v43  ;;  %v4060_v3 = vld [vmem:[%s5819_s5 + $0x160] sm:$0xff]   ;;  %v2430_v20 = vmax.f32 %v5428_v41, %v2415_v52  ;;  %v4089_v52 = vld [vmem:[%s5823_s9 + $0x10] sm:$0xff]  }
 0x46d   :  { %v4075_v44 = vld [vmem:[%s5819_s5 + $0x100] sm:$0xff]  }
 0x46e   :  { %v2451_v2 = vadd.f32 %v5496_v45, %v2423_v14  ;;  %v2497_v13 = vpop.permute.xlu0 %2496  ;;  %v2399_v35 = vpop.permute.xlu1 %2398  ;;  %v4061_v45 = vld [vmem:[%s5819_s5 + $0x120] sm:$0xff]   ;;  %v2458_v41 = vadd.f32 %v5548_v22, %v2430_v20 }
 0x46f   :  { %3684 = vmatpush3.bf16.msra.mxu0 %v4053_v27  ;;  %v2416_v51 = vsel %vm2408_vm0, %v2358_v54, %v2399_v35 }
 0x470   :  { %v2467_v31 = vmax.f32 %v2451_v2, 0.0  ;;  %3685 = vmatprep.subr.bf16.mxu0 %v4056_v53  ;;  %v2432_v15 = vmax.f32 %v5439_v36, %v2416_v51  ;;  %v2474_v27 = vmax.f32 %v2458_v41, 0.0  ;;  %v4087_v51 = vld [vmem:[%s5823_s9 + $0x20] sm:$0xff]  }
 0x472   :  { %v2492_v50 = vpop.permute.xlu0 %2491  ;;  %v2499_v61 = vpop.permute.xlu1 %2498  ;;  %v2479_v21 = vpack.c.bf16 %v2467_v31, %v2465_v59  ;;  %v2460_v54 = vadd.f32 %v5548_v22, %v2432_v15 }
 0x473   :  { %3686 = vmatpush3.bf16.msra.mxu0 %v4057_v39  ;;  %v2493_v25 = vsel %vm246_vm6, %v5633_v4, %v2492_v50  ;;  %v2501_v33 = vsel %vm233_vm5, %v2497_v13, %v2499_v61  ;;  %v4079_v61 = vld [vmem:[%s5821_s7 + $0x30] sm:$0xff]  }
 0x474   :  { %3687 = vmatprep.subr.bf16.mxu0 %v4060_v3  ;;  %v2588_v38 = vsel %vm5540_vm1, %v2479_v21, %v2568_v9  ;;  %v2476_v28 = vmax.f32 %v2460_v54, 0.0  ;;  %v2517_v40 = vsel %vm233_vm5, %v2493_v25, %v2497_v13  ;;  %v4078_v3 = vld [vmem:[%s5821_s7 + $0x38] ss:$0 sps:$4 sm:$0xff]   ;;  %v4081_v21 = vld [vmem:[%s5821_s7 + $0x20] sm:$0xff]  }
 0x475   :  { %3112 = vmatprep.mubr.bf16.mxu0 %v2588_v38  ;;  %v3233_v50 = vsel %vm150_vm3, %v4078_v3, 0  ;;  %v4082_v9 = vld [vmem:[%s5821_s7 + $0x18] sm:$0xff]   ;;  %v4084_v38 = vld [vmem:[%s5821_s7 + $0x8] sm:$0xff]   ;;  %vm3332_vm3 = vcmask 1041408  }
 0x476   :  { %v2389_v46 = vpop.permute.xlu0 %2388  ;;  %v2505_v32 = vpop.permute.xlu1 %2504  ;;  %v2484_v14 = vpack.c.bf16 %v2476_v28, %v2474_v27 }
 0x477   :  { %3688 = vmatpush3.bf16.msra.mxu0 %v4061_v45  ;;  %v2411_v63 = vsel %vm2408_vm0, %v5620_v57, %v2389_v46  ;;  %v4073_v57 = vld [vmem:[%s5819_s5 + $0x108] sm:$0xff]   ;;  %v4083_v45 = vld [vmem:[%s5821_s7 + $0x10] sm:$0xff]  }
 0x478   :  { %3689 = vmatprep.subr.bf16.mxu0 %v4064_v55  ;;  %v2422_v62 = vmax.f32 %v5416_v37, %v2411_v63  ;;  %v2571_v59 = vshll.u32 %v2484_v14, 16  ;;  %v4085_v55 = vld [vmem:[%s5821_s7] sm:$0xff]   ;;  %v4086_v46 = vld [vmem:[%s5823_s9 + $0x28] ss:$0 sps:$4 sm:$0x33]  }
 0x479   :  { %v3567_v63 = vld [vmem:[%s5820_s6] ss:$0 sm:$0xff] }
 0x47a   :  { %v2535_v30 = vpop.permute.xlu0 %2534  ;;  %v2537_v0 = vpop.permute.xlu1 %2536  ;;  %v2450_v23 = vadd.f32 %v5548_v22, %v2422_v62 }
 0x47b   :  { %3690 = vmatpush3.bf16.msra.mxu0 %v4065_v47  ;;  %v2538_v36 = vsel %vm233_vm5, %v2535_v30, %v2537_v0  ;;  %v4088_v47 = vld [vmem:[%s5823_s9 + $0x18] sm:$0xff]  }
 0x47c   :  { %3691 = vmatprep.subr.bf16.mxu0 %v4068_v8  ;;  %v2466_v35 = vmax.f32 %v2450_v23, 0.0 }
 0x47e   :  { %v2530_v18 = vpop.permute.xlu0 %2529  ;;  %v2542_v1 = vpop.permute.xlu1 %2541 }
 0x47f   :  { %v2531_v49 = vsel %vm246_vm6, %v5625_v5, %v2530_v18  ;;  %3692 = vmatpush3.bf16.msra.mxu0 %v4069_v10  ;;  %v2554_v24 = vsel %vm216_vm4, %v2538_v36, %v2542_v1  ;;  %v2521_v5 = vsel %vm216_vm4, %v2501_v33, %v2505_v32 }
 0x480   :  { %v2551_v60 = vsel %vm233_vm5, %v2531_v49, %v2535_v30  ;;  %v2562_v11 = vshll.u32 %v2554_v24, 16  ;;  %3693 = vmatprep.subr.bf16.mxu0 %v4072_v19  ;;  %vm3376_vm5 = vcmask 74752  }
 0x481   :  { %v2560_v4 = vshll.u32 %v2551_v60, 16 }
 0x482   :  { %v2544_v34 = vpop.permute.xlu0 %2543  ;;  %v2391_v37 = vpop.permute.xlu1 %2390  ;;  %v2586_v48 = vsel %vm5540_vm1, %v2521_v5, %v2562_v11 }
 0x483   :  { %v2545_v43 = vsel %vm216_vm4, %v2542_v1, %v2544_v34  ;;  %3694 = vmatpush3.bf16.msra.mxu0 %v4073_v57  ;;  %v2412_v58 = vsel %vm2408_vm0, %v5648_v6, %v2391_v37  ;;  %3072 = vmatprep.mubr.bf16.mxu1 %v2586_v48  ;;  %v2585_v42 = vsel %vm5540_vm1, %v2517_v40, %v2560_v4  ;;  %v4077_v6 = vld [vmem:[%s5819_s5 + $0x180] sm:$0xff]   ;;  %v4090_v40 = vld [vmem:[%s5823_s9 + $0x8] sm:$0xff]  }
 0x484   :  { %v2424_v56 = vmax.f32 %v5355_v16, %v2412_v58  ;;  %3073 = vmatmul.mubr.bf16.vlgmr.msra.gmra.mxu1 %v2585_v42  ;;  %3695 = vmatprep.subr.bf16.mxu0 %v4074_v26  ;;  %v2565_v53 = vshll.u32 %v2545_v43, 16  ;;  %v4091_v34 = vld [vmem:[%s5823_s9] sm:$0xff]   ;;  %s3384_s9 = sshll.u32 %s4127_s3, 4  ;;  %s3385_s9 = int_to_ptr.vmem [resolvable:$true] %s3384_s9 }
 0x485   :  { %3723 = vmatpush3.bf16.msra.mxu1 %v4076_v17  ;;  %3726 = vmatprep.mubr.msk.bf16.mxu1 %vm4126_vm2, %v4125_v12  ;;  %v3619_v37 = vld [vmem:[%s5822_s8] ss:$0 sm:$0xff]  ;;  %s4092_s8 = scalar_lea.vmem %s3385_s9, 32  ;;  %p4097_p1 = scmp.lt.s32.totalorder %s3385_s9, %s3385_s9 }
 0x486   :  { %v2452_v2 = vadd.f32 %v5548_v22, %v2424_v56  ;;  %v2507_v13 = vpop.permute.xlu1 %2506  ;;  %3724 = vmatprep.subr.bf16.mxu1 %v4125_v12  ;;  %p4093_p0 = scmp.ne.s32.totalorder %s3385_s9, %s4092_s8  ;;  %p4098_p2 = scmp.lt.s32.totalorder %s4092_s8, %s4092_s8 }
 0x487   :  { %3696 = vmatpush3.bf16.msra.mxu0 %v4075_v44  ;;  %v2509_v16 = vsel %vm216_vm4, %v2505_v32, %v2507_v13  ;;  %v3334_v32 = vsel %vm3332_vm3, %v4086_v46, 0  ;;  %vm3328_vm4 = vcmask 687104  }
 0x488   :  { %v2468_v29 = vmax.f32 %v2452_v2, 0.0  ;;  %v2587_v39 = vsel %vm5540_vm1, %v2509_v16, %v2565_v53  ;;  %3730 = vmatprep.subr.bf16.mxu0 %v4125_v12  ;;  %p4099_p3 = por %p4098_p2, %p4097_p1 }
 0x489   :  { %3725 = vmatpush3.bf16.msra.mxu1 %v4077_v6 }
 0x48a   :  { %v2480_v31 = vpack.c.bf16 %v2468_v29, %v2466_v35  ;;  %3113 = vmatmul.mubr.bf16.vlgmr.msra.gmra.mxu0 %v2587_v39  ;;  %3750 = vmatprep.subr.bf16.mxu1 %v4125_v12  ;;  %p4100_p4 = pnand %p4099_p3, %p4093_p0 }
 0x48b   :  { %3746 = vmatprep.mubr.msk.bf16.mxu0 %vm4126_vm2, %v4125_v12  ;;  %3731 = vmatpush3.bf16.msra.mxu0 %v3233_v50 }
 0x48c   :  { %v2589_v22 = vsel %vm5540_vm1, %v2480_v31, %v2571_v59  ;;  %3732 = vmatprep.subr.bf16.mxu0 %v4125_v12 }
 0x48d   :  { %3727 = vmatmul.mubr.msk.bf16.vlgmr.msra.gmra.mxu1 %vm246_vm6, %v2589_v22 }
 0x48e   :  { %3762 = vmatprep.mubr.msk.bf16.mxu1 %vm4126_vm2, %v4125_v12  ;;  %3751 = vmatpush3.bf16.msra.mxu1 %v3334_v32 }
 0x48f   :  { %3733 = vmatpush3.bf16.msra.mxu0 %v4079_v61  ;;  %3752 = vmatprep.subr.bf16.mxu1 %v4125_v12 }
 0x490   :  { %3734 = vmatprep.subr.bf16.mxu0 %v4125_v12 }
 0x492   :  { %3753 = vmatpush3.bf16.msra.mxu1 %v4087_v51 }
 0x493   :  { %3735 = vmatpush3.bf16.msra.mxu0 %v4080_v7  ;;  %3754 = vmatprep.subr.bf16.mxu1 %v4125_v12 }
 0x494   :  { %3736 = vmatprep.subr.bf16.mxu0 %v4125_v12 }
 0x496   :  { %3755 = vmatpush3.bf16.msra.mxu1 %v4088_v47 }
 0x497   :  { %3737 = vmatpush3.bf16.msra.mxu0 %v4081_v21  ;;  %3756 = vmatprep.subr.bf16.mxu1 %v4125_v12 }
 0x498   :  { %3738 = vmatprep.subr.bf16.mxu0 %v4125_v12 }
 0x49a   :  { %3757 = vmatpush3.bf16.msra.mxu1 %v4089_v52 }
 0x49b   :  { %3739 = vmatpush3.bf16.msra.mxu0 %v4082_v9  ;;  %3758 = vmatprep.subr.bf16.mxu1 %v4125_v12 }
 0x49c   :  { %3740 = vmatprep.subr.bf16.mxu0 %v4125_v12 }
 0x49e   :  { %3759 = vmatpush3.bf16.msra.mxu1 %v4090_v40 }
 0x49f   :  { %3741 = vmatpush3.bf16.msra.mxu0 %v4083_v45  ;;  %3760 = vmatprep.subr.bf16.mxu1 %v4125_v12 }
 0x4a0   :  { %3742 = vmatprep.subr.bf16.mxu0 %v4125_v12 }
 0x4a2   :  { %3761 = vmatpush3.bf16.msra.mxu1 %v4091_v34 }
 0x4a3   :  { %3743 = vmatpush3.bf16.msra.mxu0 %v4084_v38 }
 0x4a4   :  { %3744 = vmatprep.subr.bf16.mxu0 %v4125_v12  ;;  %v3629_v12 = vld [vmem:[%s5824_s10] ss:$0 sm:$0xff] }
 0x4a7   :  { %3745 = vmatpush3.bf16.msra.mxu0 %v4085_v55 }
 0x52a   :  { %v3653_v8 = vpop.f32.mrf.mxu0 }
 0x52c   :  { %v3654_v15 = vpop.f32.mrf.mxu0 }
 0x52d   :  { %v3655_v19 = vadd.f32 %v3654_v15, %v3653_v8 }
 0x52e   :  { %v3656_v30 = vpop.f32.mrf.mxu0 }
 0x52f   :  { %v3035_v41 = vadd.f32 %v3655_v19, %v3567_v63 }
 0x530   :  { %v3657_v0 = vpop.f32.mrf.mxu0 }
 0x544   :  { %v3675_v20 = vpop.f32.mrf.mxu1 }
 0x546   :  { %v3676_v10 = vpop.f32.mrf.mxu1 }
 0x547   :  { %v3677_v36 = vadd.f32 %v3676_v10, %v3675_v20 }
 0x548   :  { %v3678_v54 = vpop.f32.mrf.mxu1 }
 0x549   :  { %v3075_v49 = vadd.f32 %v3677_v36, %v3035_v41 }
 0x54a   :  { %v3697_v18 = vpop.f32.mrf.mxu0  ;;  %v3679_v1 = vpop.f32.mrf.mxu1 }
 0x54c   :  { %v3698_v25 = vpop.f32.mrf.mxu0 }
 0x54d   :  { %v3699_v24 = vadd.f32 %v3698_v25, %v3697_v18  ;;  %v3154_v57 = vpop.f32.mrf.mxu1 }
 0x54e   :  { %v3700_v33 = vpop.f32.mrf.mxu0 }
 0x54f   :  { %v3115_v62 = vadd.f32 %v3699_v24, %v3075_v49  ;;  %v3728_v60 = vpop.f32.mrf.mxu1 }
 0x550   :  { %v3701_v11 = vpop.f32.mrf.mxu0 }
 0x551   :  { %v3155_v26 = vadd.f32 %v3154_v57, %v3115_v62  ;;  %v3157_v5 = vpop.f32.mrf.mxu1 }
 0x553   :  { %v3160_v4 = vmax.f32 %v3155_v26, 0.0  ;;  %v3729_v17 = vpop.f32.mrf.mxu1 }
 0x555   :  { %v3161_v28 = vpack.c.bf16 %v3160_v4, %v3160_v4 }
 0x557   :  { %3747 = vmatmul.mubr.msk.bf16.vlgmr.msra.gmra.mxu0 %vm1189_vm11, %v3161_v28 }
 0x617   :  { %v3269_v48 = vpop.f32.mrf.mxu0 }
 0x618   :  { %v3270_v43 = vadd.f32 %v3619_v37, %v3269_v48 }
 0x619   :  { %v3748_v58 = vpop.f32.mrf.mxu0 }
 0x61a   :  { %v3275_v42 = vmax.f32 %v3270_v43, 0.0 }
 0x61b   :  { %v3272_v44 = vpop.f32.mrf.mxu0 }
 0x61c   :  { %v3276_v27 = vpack.c.bf16 %v3275_v42, %v3275_v42 }
 0x61d   :  { %v3749_v23 = vpop.f32.mrf.mxu0 }
 0x61e   :  { %3763 = vmatmul.mubr.msk.bf16.vlgmr.msra.gmra.mxu1 %vm3328_vm4, %v3276_v27 }
 0x6de   :  { %v3370_v56 = vpop.f32.mrf.mxu1 }
 0x6df   :  { %v3371_v6 = vadd.f32 %v3629_v12, %v3370_v56 }
 0x6e0   :  { %v3764_v14 = vpop.f32.mrf.mxu1 }
 0x6e1   :  { %3377 = vst.msk [vmem:[#allocation2] sm:$0x3] %vm3376_vm5, %v3371_v6 }
 0x6e2   :  { %v3373_v53 = vpop.f32.mrf.mxu1 }
 0x6e3   :  { %4103 = shalt.err (!%p4100_p4)
}
 0x6e4   :  { %3387 = dma.vmem_to_hbm [thread:$0]  %s3385_s9, 32, %s5825_s11, [#allocation3]   ;;  %v3765_v2 = vpop.f32.mrf.mxu1 }
 0x6e5   :  { %4112 = dma.done.wait [#allocation3], 32  }
 0x6e6   :  { %4113 = vsyncadd [#allocation3], 4294967264 }
 0x6e7   :  { %3391 = vsyncpa [#allocation3], 1 }

</bundles_post_ra>
